<compile_context>
chip_gen: v7x
topology: tpu7x:2x2x1
jax: 0.10.0
libtpu: 0.0.40
codegen_flags: <defaults>
</compile_context>

<pallas_src>
import functools

import numpy as np
import jax
import jax.numpy as jnp
from jax import lax
from jax.experimental import pallas as pl
from jax.experimental.pallas import tpu as pltpu

DIM = 16          # `dim` (channels C); divisible by groups=4 and factor=4
KS = 3            # kernel_size
GROUPS = 4
FACTOR = 4
EPS = 1e-5        # PyTorch BatchNorm2d default eps


# ----------------------------- Pallas kernel ------------------------------ #
def _att_kernel(masks_ref, xa_ref, xf_ref,
                wbig_ref, bbig_ref, wa1k_ref, wa2_ref,
                out_ref, *, W, C, C2, b_tile):
    masks = masks_ref[...]            # (9, HW) constant border masks
    wbig = wbig_ref[...]              # (2C+C2, 10C) fused weight
    bbig = bbig_ref[...]              # (2C+C2, 1)  fused bias column
    wa1k = wa1k_ref[...]              # (C2, C)
    wa2 = wa2_ref[...]                # (C, C2)
    HW = xa_ref.shape[-1]

    for bi in range(b_tile):          # static unroll over the batch tile
        xa = xa_ref[bi]               # (C, HW) attribution map
        xf = xf_ref[bi]               # (C, HW) feature map

        # Build the stacked operand: 9 lane-rolled, border-masked views of xa
        # (grouped 3x3 'SAME' conv taps) followed by xf.  Rolls use the XLU;
        # masks are precomputed constants (no in-kernel iota/compares).
        views = []
        for ky in range(KS):
            for kx in range(KS):
                t = ky * KS + kx
                dy = ky - KS // 2
                dx = kx - KS // 2
                if dy == 0 and dx == 0:
                    views.append(xa)
                else:
                    shift = dy * W + dx
                    xs = pltpu.roll(xa, (-shift) % HW, axis=1)
                    views.append(xs * masks[t:t + 1, :])
        stacked = jnp.concatenate(views + [xf], axis=0)          # (10C, HW)

        # One fused MXU dot produces [k1_pre | wa1_x@xa | v] at once.
        big = jnp.dot(wbig, stacked,
                      preferred_element_type=jnp.float32) + bbig  # (2C+C2, HW)

        k1 = jnp.maximum(big[0:C], 0.0)                           # (C, HW)
        h1 = jnp.maximum(
            jnp.dot(wa1k, k1, preferred_element_type=jnp.float32)
            + big[C:C + C2], 0.0)                                 # (C2, HW)
        v = big[C + C2:]                                          # (C, HW)

        # second 1x1 conv (kernel-tap mean folded; bias cancels in softmax)
        att = jnp.dot(wa2, h1, preferred_element_type=jnp.float32)

        # softmax over the spatial (lane) axis per channel, then scale v
        m = jnp.max(att, axis=1, keepdims=True)
        e = jnp.exp(att - m)
        denom = jnp.sum(e, axis=1, keepdims=True)
        k2 = e * pl.reciprocal(denom, approx=False) * v

        out_ref[bi] = (k1 + k2).astype(out_ref.dtype)


# ------------------------------- wrapper ---------------------------------- #
def _border_masks(H, W):
    """Constant (KS*KS, H*W) validity masks for the 'SAME' conv taps."""
    HW = H * W
    lane = np.arange(HW)
    row, col = lane // W, lane % W
    masks = np.ones((KS * KS, HW), np.float32)
    for ky in range(KS):
        for kx in range(KS):
            dy, dx = ky - KS // 2, kx - KS // 2
            valid = ((row + dy >= 0) & (row + dy < H) &
                     (col + dx >= 0) & (col + dx < W))
            masks[ky * KS + kx] = valid.astype(np.float32)
    return jnp.asarray(masks)


def _pick_b_tile(bs, max_tile=8):
    """Largest divisor of bs <= max_tile that keeps >=2 grid steps
    (v7x megacore parity) while amortizing per-grid-step overhead."""
    best = 1
    for d in range(1, min(bs, max_tile) + 1):
        if bs % d == 0 and bs // d >= 2:
            best = d
    return best


def att_attention_pallas(feature_map, attribution_map, kparams, b_tile=None):
    """feature_map / attribution_map: NCHW float32. Returns NCHW float32."""
    bs, C, H, W = attribution_map.shape
    HW = H * W
    C2 = 2 * C // FACTOR

    wbig, bbig, wa1k, wa2 = kparams

    if b_tile is None:
        b_tile = _pick_b_tile(bs)
    assert bs % b_tile == 0
    grid = (bs // b_tile,)

    # channels-on-sublane layout: contiguous reshape only (no transpose/pad)
    xa = attribution_map.reshape(bs, C, HW)
    xf = feature_map.reshape(bs, C, HW)
    masks = _border_masks(H, W)

    def per_b():
        return pl.BlockSpec((b_tile, C, HW), lambda b: (b, 0, 0))

    def full(arr):
        return pl.BlockSpec(arr.shape, lambda b, n=arr.ndim: (0,) * n)

    M_big, K_big = wbig.shape
    flops = 2 * bs * HW * (M_big * K_big + C2 * C + C * C2)
    bytes_accessed = 4 * (3 * bs * C * HW + wbig.size + bbig.size +
                          wa1k.size + wa2.size + masks.size)

    out = pl.pallas_call(
        functools.partial(_att_kernel, W=W, C=C, C2=C2, b_tile=b_tile),
        out_shape=jax.ShapeDtypeStruct((bs, C, HW), jnp.float32),
        grid=grid,
        in_specs=[
            full(masks),                    # constant border masks
            per_b(),                        # xa
            per_b(),                        # xf
            full(wbig), full(bbig),         # fused conv/value/attn-x weight+bias
            full(wa1k), full(wa2),
        ],
        out_specs=per_b(),
        compiler_params=pltpu.CompilerParams(
            dimension_semantics=("parallel",)),
        cost_estimate=pl.CostEstimate(
            flops=flops, transcendentals=bs * C * HW,
            bytes_accessed=bytes_accessed),
    )(masks, xa, xf, wbig, bbig, wa1k, wa2)

    return out.reshape(bs, C, H, W)


# --------------------------- parameter set-up ----------------------------- #
def _bn_params(key, n):
    k1, k2, k3, k4 = jax.random.split(key, 4)
    gamma = 1.0 + 0.1 * jax.random.normal(k1, (n,), jnp.float32)
    beta = 0.1 * jax.random.normal(k2, (n,), jnp.float32)
    mean = 0.1 * jax.random.normal(k3, (n,), jnp.float32)
    var = 1.0 + 0.1 * jax.random.uniform(k4, (n,), jnp.float32)
    return gamma, beta, mean, var


def _fold_bn(bn):
    gamma, beta, mean, var = bn
    s = gamma / jnp.sqrt(var + EPS)
    b = beta - mean * s
    return s, b


def init_params(key, C=DIM):
    """Returns (torch_params, kernel_params)."""
    C2 = 2 * C // FACTOR
    cg = C // GROUPS
    ks = jax.random.split(key, 8)

    # PyTorch-shaped parameters (OIHW conv weights).
    wk_t = 0.2 * jax.random.normal(ks[0], (C, cg, KS, KS), jnp.float32)
    wv_t = 0.2 * jax.random.normal(ks[1], (C, C, 1, 1), jnp.float32)
    wa1_t = 0.2 * jax.random.normal(ks[2], (C2, 2 * C, 1, 1), jnp.float32)
    wa2_t = 0.2 * jax.random.normal(ks[3], (KS * KS * C, C2, 1, 1), jnp.float32)
    ba2_t = 0.1 * jax.random.normal(ks[4], (KS * KS * C,), jnp.float32)
    bn_k = _bn_params(ks[5], C)
    bn_v = _bn_params(ks[6], C)
    bn_a1 = _bn_params(ks[7], C2)
    torch_params = (wk_t, bn_k, wv_t, bn_v, wa1_t, bn_a1, wa2_t, ba2_t)

    # Inference-mode BN folds (scale into weights, shift into biases).
    sk, bk = _fold_bn(bn_k)
    sv, bv = _fold_bn(bn_v)
    sa1, ba1 = _fold_bn(bn_a1)

    # grouped 3x3 conv -> per-tap dense (Cout, Cin), zero outside the group
    # blocks, BN scale folded; flattened to (C, 9C) for the single K=9C dot.
    wk_np = np.zeros((KS * KS, C, C), np.float32)
    wk_src = np.asarray(wk_t)
    for co in range(C):
        g = co // cg
        for ky in range(KS):
            for kx in range(KS):
                for j in range(cg):
                    wk_np[ky * KS + kx, co, g * cg + j] = wk_src[co, j, ky, kx]
    wk_np = wk_np * np.asarray(sk)[None, :, None]
    wk_flat = wk_np.transpose(1, 0, 2).reshape(C, KS * KS * C)       # (C, 9C)

    wa1_full = np.asarray(wa1_t[:, :, 0, 0]) * np.asarray(sa1)[:, None]
    wa1_k = wa1_full[:, :C]                                          # (C2, C)
    wa1_x = wa1_full[:, C:]                                          # (C2, C)
    wv_full = np.asarray(wv_t[:, :, 0, 0]) * np.asarray(sv)[:, None]  # (C, C)

    # Fused weight: rows = [k1_pre (C) | wa1_x@xa (C2) | v (C)],
    # columns = 9 stacked xa tap blocks followed by the xf block.
    K_big = (KS * KS + 1) * C
    M_big = 2 * C + C2
    center = (KS * KS) // 2                       # center tap view == xa
    wbig = np.zeros((M_big, K_big), np.float32)
    wbig[0:C, 0:KS * KS * C] = wk_flat
    wbig[C:C + C2, center * C:(center + 1) * C] = wa1_x
    wbig[C + C2:, KS * KS * C:] = wv_full
    bbig = np.concatenate([np.asarray(bk), np.asarray(ba1), np.asarray(bv)])
    bbig = bbig.reshape(M_big, 1).astype(np.float32)

    # final 1x1 conv: fold the KS*KS kernel-tap mean into the weights
    # (linear-exact). Its bias is constant per channel over the spatial
    # softmax axis, so it cancels exactly and is dropped from the kernel.
    wa2 = np.asarray(wa2_t[:, :, 0, 0]).reshape(C, KS * KS, C2).mean(1)

    kernel_params = (jnp.asarray(wbig), jnp.asarray(bbig),
                     jnp.asarray(wa1_k), jnp.asarray(wa2))
    return torch_params, kernel_params


# ------------------------ plain-JAX reference (NCHW) ----------------------- #
def reference(feature_map, attribution_map, torch_params):
    wk_t, bn_k, wv_t, bn_v, wa1_t, bn_a1, wa2_t, ba2_t = torch_params
    dn = ("NCHW", "OIHW", "NCHW")

    def bn(x, p):
        g, b, m, v = (a[None, :, None, None] for a in p)
        return (x - m) / jnp.sqrt(v + EPS) * g + b

    bs, C, H, W = attribution_map.shape
    k1 = lax.conv_general_dilated(attribution_map, wk_t, (1, 1), "SAME",
                                  feature_group_count=GROUPS,
                                  dimension_numbers=dn)
    k1 = jax.nn.relu(bn(k1, bn_k))
    v = bn(lax.conv_general_dilated(feature_map, wv_t, (1, 1), "SAME",
                                    dimension_numbers=dn), bn_v)
    v = v.reshape(bs, C, H * W)
    y = jnp.concatenate([k1, attribution_map], axis=1)
    h1 = jax.nn.relu(bn(lax.conv_general_dilated(y, wa1_t, (1, 1), "SAME",
                                                 dimension_numbers=dn), bn_a1))
    att = lax.conv_general_dilated(h1, wa2_t, (1, 1), "SAME",
                                   dimension_numbers=dn)
    att = att + ba2_t[None, :, None, None]
    att = att.reshape(bs, C, KS * KS, H, W).mean(2).reshape(bs, C, H * W)
    k2 = jax.nn.softmax(att, axis=-1) * v
    return k1 + k2.reshape(bs, C, H, W)


# --------------------------------- main ------------------------------------ #
if __name__ == "__main__":
    key = jax.random.PRNGKey(0)
    kx, ka, kp = jax.random.split(key, 3)

    # bs=4 so the batched grid path (B_TILE=2, two "parallel" steps) is used.
    bs, C, H, W = 4, DIM, 16, 16
    feature_map = jax.random.normal(kx, (bs, C, H, W), jnp.float32)
    attribution_map = jax.random.normal(ka, (bs, C, H, W), jnp.float32)

    torch_params, kernel_params = init_params(kp, C)

    out = att_attention_pallas(feature_map, attribution_map, kernel_params)
    out = jax.block_until_ready(out)

    ref = jax.block_until_ready(reference(feature_map, attribution_map,
                                          torch_params))
    assert out.shape == (bs, C, H, W)
    assert jnp.allclose(out, ref, atol=1e-3, rtol=1e-3), \
        float(jnp.max(jnp.abs(out - ref)))
    print("KERNEL_OK")
</pallas_src>

<mosaic_0001>
module attributes {stable_mosaic.version = 11 : i64} {
  func.func @_att_kernel(%arg0: i32, %arg1: memref<9x256xf32, #tpu.memory_space<vmem>>, %arg2: memref<2x16x256xf32, #tpu.memory_space<vmem>>, %arg3: memref<2x16x256xf32, #tpu.memory_space<vmem>>, %arg4: memref<40x160xf32, #tpu.memory_space<vmem>>, %arg5: memref<40x1xf32, #tpu.memory_space<vmem>>, %arg6: memref<8x16xf32, #tpu.memory_space<vmem>>, %arg7: memref<16x8xf32, #tpu.memory_space<vmem>>, %arg8: memref<2x16x256xf32, #tpu.memory_space<vmem>>) attributes {dimension_semantics = [#tpu.dimension_semantics<parallel>], iteration_bounds = array<i64: 2>, scalar_prefetch = 0 : i64, scratch_operands = 0 : i64, tpu.core_type = #tpu.core_type<tc>, window_params = [{pipeline_mode = #tpu.pipeline_mode<synchronous>, transform_indices = @transform_0, window_bounds = array<i64: 9, 256>}, {transform_indices = @transform_1, window_bounds = array<i64: 2, 16, 256>}, {transform_indices = @transform_2, window_bounds = array<i64: 2, 16, 256>}, {pipeline_mode = #tpu.pipeline_mode<synchronous>, transform_indices = @transform_3, window_bounds = array<i64: 40, 160>}, {pipeline_mode = #tpu.pipeline_mode<synchronous>, transform_indices = @transform_4, window_bounds = array<i64: 40, 1>}, {pipeline_mode = #tpu.pipeline_mode<synchronous>, transform_indices = @transform_5, window_bounds = array<i64: 8, 16>}, {pipeline_mode = #tpu.pipeline_mode<synchronous>, transform_indices = @transform_6, window_bounds = array<i64: 16, 8>}, {transform_indices = @transform_7, window_bounds = array<i64: 2, 16, 256>}]} {
    %c0 = arith.constant 0 : index
    %c0_0 = arith.constant 0 : index
    %0 = vector.load %arg1[%c0, %c0_0] : memref<9x256xf32, #tpu.memory_space<vmem>>, vector<9x256xf32>
    %c0_1 = arith.constant 0 : index
    %c0_2 = arith.constant 0 : index
    %1 = vector.load %arg4[%c0_1, %c0_2] : memref<40x160xf32, #tpu.memory_space<vmem>>, vector<40x160xf32>
    %c0_3 = arith.constant 0 : index
    %c0_4 = arith.constant 0 : index
    %2 = vector.load %arg5[%c0_3, %c0_4] : memref<40x1xf32, #tpu.memory_space<vmem>>, vector<40x1xf32>
    %c0_5 = arith.constant 0 : index
    %c0_6 = arith.constant 0 : index
    %3 = vector.load %arg6[%c0_5, %c0_6] : memref<8x16xf32, #tpu.memory_space<vmem>>, vector<8x16xf32>
    %c0_7 = arith.constant 0 : index
    %c0_8 = arith.constant 0 : index
    %4 = vector.load %arg7[%c0_7, %c0_8] : memref<16x8xf32, #tpu.memory_space<vmem>>, vector<16x8xf32>
    %c0_9 = arith.constant 0 : index
    %c0_10 = arith.constant 0 : index
    %c0_11 = arith.constant 0 : index
    %5 = vector.load %arg2[%c0_9, %c0_10, %c0_11] : memref<2x16x256xf32, #tpu.memory_space<vmem>>, vector<1x16x256xf32>
    %6 = vector.shape_cast %5 : vector<1x16x256xf32> to vector<16x256xf32>
    %c0_12 = arith.constant 0 : index
    %c0_13 = arith.constant 0 : index
    %c0_14 = arith.constant 0 : index
    %7 = vector.load %arg3[%c0_12, %c0_13, %c0_14] : memref<2x16x256xf32, #tpu.memory_space<vmem>>, vector<1x16x256xf32>
    %8 = vector.shape_cast %7 : vector<1x16x256xf32> to vector<16x256xf32>
    %c17_i32 = arith.constant 17 : i32
    %9 = tpu.dynamic_rotate %6 by %c17_i32 dim 1 : vector<16x256xf32>, i32 -> vector<16x256xf32>
    %10 = vector.extract_strided_slice %0 {offsets = [0, 0], sizes = [1, 256], strides = [1, 1]} : vector<9x256xf32> to vector<1x256xf32>
    %11 = vector.broadcast %10 : vector<1x256xf32> to vector<16x256xf32>
    %12 = arith.mulf %9, %11 : vector<16x256xf32>
    %c16_i32 = arith.constant 16 : i32
    %13 = tpu.dynamic_rotate %6 by %c16_i32 dim 1 : vector<16x256xf32>, i32 -> vector<16x256xf32>
    %14 = vector.extract_strided_slice %0 {offsets = [1, 0], sizes = [1, 256], strides = [1, 1]} : vector<9x256xf32> to vector<1x256xf32>
    %15 = vector.broadcast %14 : vector<1x256xf32> to vector<16x256xf32>
    %16 = arith.mulf %13, %15 : vector<16x256xf32>
    %c15_i32 = arith.constant 15 : i32
    %17 = tpu.dynamic_rotate %6 by %c15_i32 dim 1 : vector<16x256xf32>, i32 -> vector<16x256xf32>
    %18 = vector.extract_strided_slice %0 {offsets = [2, 0], sizes = [1, 256], strides = [1, 1]} : vector<9x256xf32> to vector<1x256xf32>
    %19 = vector.broadcast %18 : vector<1x256xf32> to vector<16x256xf32>
    %20 = arith.mulf %17, %19 : vector<16x256xf32>
    %c1_i32 = arith.constant 1 : i32
    %21 = tpu.dynamic_rotate %6 by %c1_i32 dim 1 : vector<16x256xf32>, i32 -> vector<16x256xf32>
    %22 = vector.extract_strided_slice %0 {offsets = [3, 0], sizes = [1, 256], strides = [1, 1]} : vector<9x256xf32> to vector<1x256xf32>
    %23 = vector.broadcast %22 : vector<1x256xf32> to vector<16x256xf32>
    %24 = arith.mulf %21, %23 : vector<16x256xf32>
    %c255_i32 = arith.constant 255 : i32
    %25 = tpu.dynamic_rotate %6 by %c255_i32 dim 1 : vector<16x256xf32>, i32 -> vector<16x256xf32>
    %26 = vector.extract_strided_slice %0 {offsets = [5, 0], sizes = [1, 256], strides = [1, 1]} : vector<9x256xf32> to vector<1x256xf32>
    %27 = vector.broadcast %26 : vector<1x256xf32> to vector<16x256xf32>
    %28 = arith.mulf %25, %27 : vector<16x256xf32>
    %c241_i32 = arith.constant 241 : i32
    %29 = tpu.dynamic_rotate %6 by %c241_i32 dim 1 : vector<16x256xf32>, i32 -> vector<16x256xf32>
    %30 = vector.extract_strided_slice %0 {offsets = [6, 0], sizes = [1, 256], strides = [1, 1]} : vector<9x256xf32> to vector<1x256xf32>
    %31 = vector.broadcast %30 : vector<1x256xf32> to vector<16x256xf32>
    %32 = arith.mulf %29, %31 : vector<16x256xf32>
    %c240_i32 = arith.constant 240 : i32
    %33 = tpu.dynamic_rotate %6 by %c240_i32 dim 1 : vector<16x256xf32>, i32 -> vector<16x256xf32>
    %34 = vector.extract_strided_slice %0 {offsets = [7, 0], sizes = [1, 256], strides = [1, 1]} : vector<9x256xf32> to vector<1x256xf32>
    %35 = vector.broadcast %34 : vector<1x256xf32> to vector<16x256xf32>
    %36 = arith.mulf %33, %35 : vector<16x256xf32>
    %c239_i32 = arith.constant 239 : i32
    %37 = tpu.dynamic_rotate %6 by %c239_i32 dim 1 : vector<16x256xf32>, i32 -> vector<16x256xf32>
    %38 = vector.extract_strided_slice %0 {offsets = [8, 0], sizes = [1, 256], strides = [1, 1]} : vector<9x256xf32> to vector<1x256xf32>
    %39 = vector.broadcast %38 : vector<1x256xf32> to vector<16x256xf32>
    %40 = arith.mulf %37, %39 : vector<16x256xf32>
    %41 = tpu.concatenate %12, %16, %20, %24, %6, %28, %32, %36, %40, %8 in 0 : vector<16x256xf32>, vector<16x256xf32>, vector<16x256xf32>, vector<16x256xf32>, vector<16x256xf32>, vector<16x256xf32>, vector<16x256xf32>, vector<16x256xf32>, vector<16x256xf32>, vector<16x256xf32> -> vector<160x256xf32>
    %cst = arith.constant dense<0.000000e+00> : vector<40x256xf32>
    %42 = tpu.matmul %1, %41, %cst {dimension_numbers = #tpu.dot_dimension_numbers<[1], [0], [0], [1], [0, 0, 1, 1], [], []>} : vector<40x160xf32>, vector<160x256xf32>, vector<40x256xf32> -> vector<40x256xf32>
    %43 = vector.broadcast %2 : vector<40x1xf32> to vector<40x256xf32>
    %44 = arith.addf %42, %43 : vector<40x256xf32>
    %45 = vector.extract_strided_slice %44 {offsets = [0, 0], sizes = [16, 256], strides = [1, 1]} : vector<40x256xf32> to vector<16x256xf32>
    %cst_15 = arith.constant 0.000000e+00 : f32
    %46 = vector.broadcast %cst_15 : f32 to vector<16x256xf32>
    %47 = arith.maximumf %45, %46 : vector<16x256xf32>
    %cst_16 = arith.constant dense<0.000000e+00> : vector<8x256xf32>
    %48 = tpu.matmul %3, %47, %cst_16 {dimension_numbers = #tpu.dot_dimension_numbers<[1], [0], [0], [1], [0, 0, 1, 1], [], []>} : vector<8x16xf32>, vector<16x256xf32>, vector<8x256xf32> -> vector<8x256xf32>
    %49 = vector.extract_strided_slice %44 {offsets = [16, 0], sizes = [8, 256], strides = [1, 1]} : vector<40x256xf32> to vector<8x256xf32>
    %50 = arith.addf %48, %49 : vector<8x256xf32>
    %cst_17 = arith.constant 0.000000e+00 : f32
    %51 = vector.broadcast %cst_17 : f32 to vector<8x256xf32>
    %52 = arith.maximumf %50, %51 : vector<8x256xf32>
    %53 = vector.extract_strided_slice %44 {offsets = [24, 0], sizes = [16, 256], strides = [1, 1]} : vector<40x256xf32> to vector<16x256xf32>
    %cst_18 = arith.constant dense<0.000000e+00> : vector<16x256xf32>
    %54 = tpu.matmul %4, %52, %cst_18 {dimension_numbers = #tpu.dot_dimension_numbers<[1], [0], [0], [1], [0, 0, 1, 1], [], []>} : vector<16x8xf32>, vector<8x256xf32>, vector<16x256xf32> -> vector<16x256xf32>
    %cst_19 = arith.constant dense<0xFF800000> : vector<16xf32>
    %55 = vector.multi_reduction <maximumf>, %54, %cst_19 [1] : vector<16x256xf32> to vector<16xf32>
    %56 = vector.shape_cast %55 : vector<16xf32> to vector<16x1xf32>
    %57 = vector.broadcast %56 : vector<16x1xf32> to vector<16x256xf32>
    %58 = arith.subf %54, %57 : vector<16x256xf32>
    %59 = math.exp %58 : vector<16x256xf32>
    %cst_20 = arith.constant dense<0.000000e+00> : vector<16xf32>
    %60 = vector.multi_reduction <add>, %59, %cst_20 [1] : vector<16x256xf32> to vector<16xf32>
    %61 = vector.shape_cast %60 : vector<16xf32> to vector<16x1xf32>
    %62 = tpu.reciprocal %61 : vector<16x1xf32> -> vector<16x1xf32>
    %63 = vector.broadcast %62 : vector<16x1xf32> to vector<16x256xf32>
    %64 = arith.mulf %59, %63 : vector<16x256xf32>
    %65 = arith.mulf %64, %53 : vector<16x256xf32>
    %66 = arith.addf %47, %65 : vector<16x256xf32>
    %c0_21 = arith.constant 0 : index
    %c0_22 = arith.constant 0 : index
    %c0_23 = arith.constant 0 : index
    %67 = vector.load %arg8[%c0_21, %c0_22, %c0_23] : memref<2x16x256xf32, #tpu.memory_space<vmem>>, vector<1x16x256xf32>
    %68 = vector.shape_cast %67 : vector<1x16x256xf32> to vector<16x256xf32>
    %69 = vector.shape_cast %66 : vector<16x256xf32> to vector<1x16x256xf32>
    tpu.vector_store %arg8[%c0_21, %c0_22, %c0_23], %69 {strides = array<i32>} : memref<2x16x256xf32, #tpu.memory_space<vmem>>, vector<1x16x256xf32>,
    %c1 = arith.constant 1 : index
    %c0_24 = arith.constant 0 : index
    %c0_25 = arith.constant 0 : index
    %70 = vector.load %arg2[%c1, %c0_24, %c0_25] : memref<2x16x256xf32, #tpu.memory_space<vmem>>, vector<1x16x256xf32>
    %71 = vector.shape_cast %70 : vector<1x16x256xf32> to vector<16x256xf32>
    %c1_26 = arith.constant 1 : index
    %c0_27 = arith.constant 0 : index
    %c0_28 = arith.constant 0 : index
    %72 = vector.load %arg3[%c1_26, %c0_27, %c0_28] : memref<2x16x256xf32, #tpu.memory_space<vmem>>, vector<1x16x256xf32>
    %73 = vector.shape_cast %72 : vector<1x16x256xf32> to vector<16x256xf32>
    %c17_i32_29 = arith.constant 17 : i32
    %74 = tpu.dynamic_rotate %71 by %c17_i32_29 dim 1 : vector<16x256xf32>, i32 -> vector<16x256xf32>
    %75 = vector.extract_strided_slice %0 {offsets = [0, 0], sizes = [1, 256], strides = [1, 1]} : vector<9x256xf32> to vector<1x256xf32>
    %76 = vector.broadcast %75 : vector<1x256xf32> to vector<16x256xf32>
    %77 = arith.mulf %74, %76 : vector<16x256xf32>
    %c16_i32_30 = arith.constant 16 : i32
    %78 = tpu.dynamic_rotate %71 by %c16_i32_30 dim 1 : vector<16x256xf32>, i32 -> vector<16x256xf32>
    %79 = vector.extract_strided_slice %0 {offsets = [1, 0], sizes = [1, 256], strides = [1, 1]} : vector<9x256xf32> to vector<1x256xf32>
    %80 = vector.broadcast %79 : vector<1x256xf32> to vector<16x256xf32>
    %81 = arith.mulf %78, %80 : vector<16x256xf32>
    %c15_i32_31 = arith.constant 15 : i32
    %82 = tpu.dynamic_rotate %71 by %c15_i32_31 dim 1 : vector<16x256xf32>, i32 -> vector<16x256xf32>
    %83 = vector.extract_strided_slice %0 {offsets = [2, 0], sizes = [1, 256], strides = [1, 1]} : vector<9x256xf32> to vector<1x256xf32>
    %84 = vector.broadcast %83 : vector<1x256xf32> to vector<16x256xf32>
    %85 = arith.mulf %82, %84 : vector<16x256xf32>
    %c1_i32_32 = arith.constant 1 : i32
    %86 = tpu.dynamic_rotate %71 by %c1_i32_32 dim 1 : vector<16x256xf32>, i32 -> vector<16x256xf32>
    %87 = vector.extract_strided_slice %0 {offsets = [3, 0], sizes = [1, 256], strides = [1, 1]} : vector<9x256xf32> to vector<1x256xf32>
    %88 = vector.broadcast %87 : vector<1x256xf32> to vector<16x256xf32>
    %89 = arith.mulf %86, %88 : vector<16x256xf32>
    %c255_i32_33 = arith.constant 255 : i32
    %90 = tpu.dynamic_rotate %71 by %c255_i32_33 dim 1 : vector<16x256xf32>, i32 -> vector<16x256xf32>
    %91 = vector.extract_strided_slice %0 {offsets = [5, 0], sizes = [1, 256], strides = [1, 1]} : vector<9x256xf32> to vector<1x256xf32>
    %92 = vector.broadcast %91 : vector<1x256xf32> to vector<16x256xf32>
    %93 = arith.mulf %90, %92 : vector<16x256xf32>
    %c241_i32_34 = arith.constant 241 : i32
    %94 = tpu.dynamic_rotate %71 by %c241_i32_34 dim 1 : vector<16x256xf32>, i32 -> vector<16x256xf32>
    %95 = vector.extract_strided_slice %0 {offsets = [6, 0], sizes = [1, 256], strides = [1, 1]} : vector<9x256xf32> to vector<1x256xf32>
    %96 = vector.broadcast %95 : vector<1x256xf32> to vector<16x256xf32>
    %97 = arith.mulf %94, %96 : vector<16x256xf32>
    %c240_i32_35 = arith.constant 240 : i32
    %98 = tpu.dynamic_rotate %71 by %c240_i32_35 dim 1 : vector<16x256xf32>, i32 -> vector<16x256xf32>
    %99 = vector.extract_strided_slice %0 {offsets = [7, 0], sizes = [1, 256], strides = [1, 1]} : vector<9x256xf32> to vector<1x256xf32>
    %100 = vector.broadcast %99 : vector<1x256xf32> to vector<16x256xf32>
    %101 = arith.mulf %98, %100 : vector<16x256xf32>
    %c239_i32_36 = arith.constant 239 : i32
    %102 = tpu.dynamic_rotate %71 by %c239_i32_36 dim 1 : vector<16x256xf32>, i32 -> vector<16x256xf32>
    %103 = vector.extract_strided_slice %0 {offsets = [8, 0], sizes = [1, 256], strides = [1, 1]} : vector<9x256xf32> to vector<1x256xf32>
    %104 = vector.broadcast %103 : vector<1x256xf32> to vector<16x256xf32>
    %105 = arith.mulf %102, %104 : vector<16x256xf32>
    %106 = tpu.concatenate %77, %81, %85, %89, %71, %93, %97, %101, %105, %73 in 0 : vector<16x256xf32>, vector<16x256xf32>, vector<16x256xf32>, vector<16x256xf32>, vector<16x256xf32>, vector<16x256xf32>, vector<16x256xf32>, vector<16x256xf32>, vector<16x256xf32>, vector<16x256xf32> -> vector<160x256xf32>
    %cst_37 = arith.constant dense<0.000000e+00> : vector<40x256xf32>
    %107 = tpu.matmul %1, %106, %cst_37 {dimension_numbers = #tpu.dot_dimension_numbers<[1], [0], [0], [1], [0, 0, 1, 1], [], []>} : vector<40x160xf32>, vector<160x256xf32>, vector<40x256xf32> -> vector<40x256xf32>
    %108 = vector.broadcast %2 : vector<40x1xf32> to vector<40x256xf32>
    %109 = arith.addf %107, %108 : vector<40x256xf32>
    %110 = vector.extract_strided_slice %109 {offsets = [0, 0], sizes = [16, 256], strides = [1, 1]} : vector<40x256xf32> to vector<16x256xf32>
    %cst_38 = arith.constant 0.000000e+00 : f32
    %111 = vector.broadcast %cst_38 : f32 to vector<16x256xf32>
    %112 = arith.maximumf %110, %111 : vector<16x256xf32>
    %cst_39 = arith.constant dense<0.000000e+00> : vector<8x256xf32>
    %113 = tpu.matmul %3, %112, %cst_39 {dimension_numbers = #tpu.dot_dimension_numbers<[1], [0], [0], [1], [0, 0, 1, 1], [], []>} : vector<8x16xf32>, vector<16x256xf32>, vector<8x256xf32> -> vector<8x256xf32>
    %114 = vector.extract_strided_slice %109 {offsets = [16, 0], sizes = [8, 256], strides = [1, 1]} : vector<40x256xf32> to vector<8x256xf32>
    %115 = arith.addf %113, %114 : vector<8x256xf32>
    %cst_40 = arith.constant 0.000000e+00 : f32
    %116 = vector.broadcast %cst_40 : f32 to vector<8x256xf32>
    %117 = arith.maximumf %115, %116 : vector<8x256xf32>
    %118 = vector.extract_strided_slice %109 {offsets = [24, 0], sizes = [16, 256], strides = [1, 1]} : vector<40x256xf32> to vector<16x256xf32>
    %cst_41 = arith.constant dense<0.000000e+00> : vector<16x256xf32>
    %119 = tpu.matmul %4, %117, %cst_41 {dimension_numbers = #tpu.dot_dimension_numbers<[1], [0], [0], [1], [0, 0, 1, 1], [], []>} : vector<16x8xf32>, vector<8x256xf32>, vector<16x256xf32> -> vector<16x256xf32>
    %cst_42 = arith.constant dense<0xFF800000> : vector<16xf32>
    %120 = vector.multi_reduction <maximumf>, %119, %cst_42 [1] : vector<16x256xf32> to vector<16xf32>
    %121 = vector.shape_cast %120 : vector<16xf32> to vector<16x1xf32>
    %122 = vector.broadcast %121 : vector<16x1xf32> to vector<16x256xf32>
    %123 = arith.subf %119, %122 : vector<16x256xf32>
    %124 = math.exp %123 : vector<16x256xf32>
    %cst_43 = arith.constant dense<0.000000e+00> : vector<16xf32>
    %125 = vector.multi_reduction <add>, %124, %cst_43 [1] : vector<16x256xf32> to vector<16xf32>
    %126 = vector.shape_cast %125 : vector<16xf32> to vector<16x1xf32>
    %127 = tpu.reciprocal %126 : vector<16x1xf32> -> vector<16x1xf32>
    %128 = vector.broadcast %127 : vector<16x1xf32> to vector<16x256xf32>
    %129 = arith.mulf %124, %128 : vector<16x256xf32>
    %130 = arith.mulf %129, %118 : vector<16x256xf32>
    %131 = arith.addf %112, %130 : vector<16x256xf32>
    %c1_44 = arith.constant 1 : index
    %c0_45 = arith.constant 0 : index
    %c0_46 = arith.constant 0 : index
    %132 = vector.load %arg8[%c1_44, %c0_45, %c0_46] : memref<2x16x256xf32, #tpu.memory_space<vmem>>, vector<1x16x256xf32>
    %133 = vector.shape_cast %132 : vector<1x16x256xf32> to vector<16x256xf32>
    %134 = vector.shape_cast %131 : vector<16x256xf32> to vector<1x16x256xf32>
    tpu.vector_store %arg8[%c1_44, %c0_45, %c0_46], %134 {strides = array<i32>} : memref<2x16x256xf32, #tpu.memory_space<vmem>>, vector<1x16x256xf32>,
    return
  }
  func.func @transform_0(%arg0: i32) -> (i32, i32) {
    %c0_i32 = arith.constant 0 : i32
    %c0_i32_0 = arith.constant 0 : i32
    %c0_i32_1 = arith.constant 0 : i32
    return %c0_i32, %c0_i32_0 : i32, i32
  }
  func.func @transform_1(%arg0: i32) -> (i32, i32, i32) {
    %c0_i32 = arith.constant 0 : i32
    %c0_i32_0 = arith.constant 0 : i32
    %c0_i32_1 = arith.constant 0 : i32
    return %arg0, %c0_i32, %c0_i32_0 : i32, i32, i32
  }
  func.func @transform_2(%arg0: i32) -> (i32, i32, i32) {
    %c0_i32 = arith.constant 0 : i32
    %c0_i32_0 = arith.constant 0 : i32
    %c0_i32_1 = arith.constant 0 : i32
    return %arg0, %c0_i32, %c0_i32_0 : i32, i32, i32
  }
  func.func @transform_3(%arg0: i32) -> (i32, i32) {
    %c0_i32 = arith.constant 0 : i32
    %c0_i32_0 = arith.constant 0 : i32
    %c0_i32_1 = arith.constant 0 : i32
    return %c0_i32, %c0_i32_0 : i32, i32
  }
  func.func @transform_4(%arg0: i32) -> (i32, i32) {
    %c0_i32 = arith.constant 0 : i32
    %c0_i32_0 = arith.constant 0 : i32
    %c0_i32_1 = arith.constant 0 : i32
    return %c0_i32, %c0_i32_0 : i32, i32
  }
  func.func @transform_5(%arg0: i32) -> (i32, i32) {
    %c0_i32 = arith.constant 0 : i32
    %c0_i32_0 = arith.constant 0 : i32
    %c0_i32_1 = arith.constant 0 : i32
    return %c0_i32, %c0_i32_0 : i32, i32
  }
  func.func @transform_6(%arg0: i32) -> (i32, i32) {
    %c0_i32 = arith.constant 0 : i32
    %c0_i32_0 = arith.constant 0 : i32
    %c0_i32_1 = arith.constant 0 : i32
    return %c0_i32, %c0_i32_0 : i32, i32
  }
  func.func @transform_7(%arg0: i32) -> (i32, i32, i32) {
    %c0_i32 = arith.constant 0 : i32
    %c0_i32_0 = arith.constant 0 : i32
    %c0_i32_1 = arith.constant 0 : i32
    return %arg0, %c0_i32, %c0_i32_0 : i32, i32, i32
  }
}

</mosaic_0001>

<bundles_post_ra>
// kernel: tpu_custom_call.1
= control target key start
LH: loop header
LB: loop body
LE: loop exit
PB: predicated region body
PF: predicated region fallthrough
CT: control target
= control target key end

     0   :  { %s2917_s0 = inlined_call_operand.vmem [shape: f32[9,256], index: 0, kind: input, shape index: {}]   ;;  %s2918_s1 = inlined_call_operand.hbm [shape: f32[4,16,256], index: 1, kind: input, shape index: {}]   ;;  %s2919_s2 = inlined_call_operand.hbm [shape: f32[4,16,256], index: 2, kind: input, shape index: {}]   ;;  %s2920_s3 = inlined_call_operand.hbm [shape: f32[40,160], index: 3, kind: input, shape index: {}]   ;;  %s2921_s4 = inlined_call_operand.vmem [shape: f32[40,1], index: 4, kind: input, shape index: {}]   ;;  %s2922_s5 = inlined_call_operand.vmem [shape: f32[8,16], index: 5, kind: input, shape index: {}]   ;;  %s2923_s6 = inlined_call_operand.vmem [shape: f32[16,8], index: 6, kind: input, shape index: {}]   ;;  %s2924_s7 = inlined_call_operand.hbm [shape: f32[4,16,256], index: 7, kind: output, shape index: {}]  }
   0x1   :  { %2956 = sst [smem:[#allocation32_spill]] %s2918_s1 }
   0x2   :  { %2957 = sst [smem:[#allocation33_spill]] %s2920_s3 }
   0x3   :  { %12 = vsyncpa [#allocation3], 0 }
   0x4   :  { %14 = vsyncpa [#allocation3 + $0x1], 0 }
   0x5   :  { %15 = vsyncpa [#allocation6], 0 }
   0x6   :  { %17 = vsyncpa [#allocation6 + $0x1], 0 }
   0x7   :  { %18 = vsyncpa [#allocation4], 0 }
   0x8   :  { %20 = vsyncpa [#allocation4 + $0x1], 0  ;;  %s1960_s24 = smov 0   ;;  %s1962_s25 = smov 0  }
   0x9   :  { %s1964_s26 = smov 0   ;;  %s1966_s27 = smov 0  }
   0xa LB: > { %2958 = sst [smem:[#allocation13_spill]] %s1897_s26  ;;  %s1981_s28 = sadd.s32 4294967295, %s1901_s27   ;;  %s1901_s27 = sphi %s1966_s27, %s3015_s27   ;;  %s1897_s26 = sphi %s1964_s26, %s3017_s26   ;;  %s1893_s25 = sphi %s1962_s25, %s3019_s25   ;;  %s1889_s24 = sphi %s1960_s24, %s3018_s24  }
   0xb   : > { %s1481_s29 = sadd.s32 4294967294, %s1901_s27   ;;  %p67_p0 = scmp.ne.s32.totalorder %s1893_s25, %s1889_s24 }
   0xc   : > { %p2925_p1 = scmp.eq.s32.totalorder %s1981_s28, 0  ;;  %p207_p3 = scmp.eq.s32.totalorder %s1481_s29, 1 }
   0xd   : > { %p1482_p5 = scmp.ge.s32.totalorder %s1901_s27, 1  ;;  %p214_p7 = scmp.lt.s32.totalorder %s1901_s27, 3 }
   0xe   : > { %p1990_p4 = por %p2925_p1, %p67_p0  ;;  %p1995_p6 = por %p207_p3, %p67_p0 }
   0xf   : > { %p2000_p8 = pnand %p1482_p5, %p214_p7  ;;  %s1903_s10 = smov [#allocation7]  }
  0x10   : > { %s2959_s30 = scalar_select %p1990_p4, 1, 0 }
  0x11   : > { %s2960_s8 = scalar_select %p1995_p6, 1, 0 }
  0x12   : > { %s2962_s9 = scalar_select %p2000_p8, 1, 0 }
  0x13   : > { %2961 = sst [smem:[#allocation14_spill]] %s2960_s8  ;;  %s229_s11 = sshll.u32 %s1903_s10, 4  ;;  %s2004_s11 = int_to_ptr.vmem [resolvable:$true] %s229_s11 }
  0x14   : > { %p1648_p9 = pneg %p2000_p8  ;;  %s2016_s13 = sadd.s32 1, %s1901_s27  }
  0x15   : > { %2964 = sst [smem:[#allocation15_spill]] %s2016_s13  ;;  %s54_s14 = sadd.s32 1, %s1897_s26 }
  0x16   : > { %p2011_p11 = pnand %p1648_p9, %p2925_p1  ;;  %s51_s15 = ssub.s32 %s1901_s27, %s2016_s13 }
  0x17   : > { %s2965_s3 = sld [smem:[#allocation33_spill]] }
  0x18   : > { %p1741_p13 = pneg %p2011_p11 }
  0x1d   : > { %s1739_s18 = scalar_lea.hbm %s2965_s3, 1280 }
  0x1e   : > { %p1740_p12 = scmp.ne.s32.totalorder %s2965_s3, %s1739_s18  ;;  %p1746_p5 = scmp.lt.u32.totalorder %s1739_s18, %s2965_s3 }
  0x20   : > { %p1742_p0 = pnand %p1741_p13, %p1740_p12 }
  0x22   : > { %p1743_p3 = pneg %p1742_p0 }
  0x24   : > { %p1748_p7 = pnand %p1746_p5, %p1743_p3 }
  0x26   : > { %1751 = shalt.err (!%p1748_p7)
}
  0x27   : > { %s1752_s23 = scalar_lea.vmem %s2004_s11, 1280  ;;  %p1760_p2 = scmp.lt.s32.totalorder %s2004_s11, %s2004_s11 }
  0x28   : > { %p1753_p9 = scmp.ne.s32.totalorder %s2004_s11, %s1752_s23  ;;  %p1761_p6 = scmp.lt.s32.totalorder %s1752_s23, %s1752_s23 }
  0x2a   : > { %p1755_p10 = pnand %p1753_p9, %p1741_p13  ;;  %p1762_p4 = por %p1761_p6, %p1760_p2 }
  0x2c   : > { %p1756_p1 = pneg %p1755_p10 }
  0x2e   : > { %p1763_p8 = pnand %p1762_p4, %p1756_p1 }
  0x30   : > { %1766 = shalt.err (!%p1763_p8)
}
  0x31   : > { %s2928_s29 = smov 256   ;;  %s2930_s10 = smov 16  }
  0x32   : > { %1651 = dma.hbm_to_vmem [thread:$0]  (!%p2011_p11), %s2965_s3, 1280, %s2004_s11, [#allocation6], %s2928_s29, %s2928_s29, %s2930_s10  }
  0x33   : > { %p52_p1 = scmp.eq.s32.totalorder %s51_s15, 0  ;;  %p61_p2 = scmp.ne.s32.totalorder %s1897_s26, %s1893_s25 }
  0x34   : > { %p62_p4 = scmp.eq.s32.totalorder %s1901_s27, 0  ;;  %p1664_p6 = scmp.lt.s32.totalorder %s1901_s27, 2 }
  0x35   : > { %s2050_s18 = scalar_select %p52_p1, %s1897_s26, %s54_s14  }
  0x36   : > { %p63_p8 = por %p62_p4, %p61_p2  ;;  %p2967_p10 = scmp.eq.s32.totalorder %s1981_s28, 1 }
  0x37   : > { %2966 = sst [smem:[#allocation16_spill]] %s2050_s18  ;;  %s252_s12 = sand.u32 1, %s1897_s26  }
  0x38   : > { %p2054_p12 = por %p2967_p10, %p61_p2  ;;  %s1535_s20 = sshll.u32 %s1901_s27, 10 }
  0x39   : > { %s2060_s21 = sshll.u32 %s252_s12, 6  ;;  %s2969_s1 = sld [smem:[#allocation32_spill]] }
  0x3a   : > { %s256_s14 = scalar_lea.vmem [#allocation2], %s2060_s21  ;;  %p2068_p11 = pnand %p1664_p6, %p63_p8 }
  0x3b   : > { %s264_s15 = sshll.u32 %s256_s14, 4  ;;  %s2077_s22 = scalar_lea.hbm %s2919_s2, %s1535_s20  ;;  %s2072_s15 = int_to_ptr.vmem [resolvable:$true] %s264_s15 }
  0x3c   : > { %s2079_s23 = scalar_lea.sflag [#allocation3], %s252_s12  ;;  %p1769_p0 = pneg %p2068_p11 }
  0x3f   : > { %s2065_s11 = scalar_lea.hbm %s2969_s1, %s1535_s20  ;;  %s1772_s18 = scalar_lea.hbm %s2969_s1, 2048 }
  0x40   : > { %s1767_s10 = scalar_lea.hbm %s2065_s11, 1024  ;;  %p1773_p7 = scmp.lt.u32.totalorder %s2065_s11, %s2969_s1 }
  0x41   : > { %p1768_p13 = scmp.ne.s32.totalorder %s2065_s11, %s1767_s10  ;;  %p1774_p9 = scmp.lt.u32.totalorder %s1772_s18, %s1767_s10 }
  0x42   : > { %p1776_p2 = scmp.lt.u32.totalorder %s1767_s10, %s2065_s11 }
  0x43   : > { %p1770_p3 = pnand %p1769_p0, %p1768_p13  ;;  %p1775_p1 = por %p1774_p9, %p1773_p7 }
  0x45   : > { %p1771_p5 = pneg %p1770_p3  ;;  %p1777_p4 = por %p1776_p2, %p1775_p1 }
  0x47   : > { %p1778_p6 = pnand %p1777_p4, %p1771_p5 }
  0x49   : > { %1781 = shalt.err (!%p1778_p6)
}
  0x4a   : > { %s1782_s29 = scalar_lea.vmem %s2072_s15, 1024  ;;  %s1906_s3 = smov [#allocation2]  }
  0x4b   : > { %p1783_p8 = scmp.ne.s32.totalorder %s2072_s15, %s1782_s29  ;;  %s1787_s12 = sshll.u32 %s1906_s3, 4  ;;  %s1788_s12 = int_to_ptr.vmem [resolvable:$false] %s1787_s12 }
  0x4c   : > { %s1789_s26 = scalar_lea.vmem %s1788_s12, 2048  ;;  %p1790_p3 = scmp.lt.s32.totalorder %s2072_s15, %s1788_s12 }
  0x4d   : > { %p1785_p10 = pnand %p1783_p8, %p1769_p0  ;;  %p1791_p7 = scmp.lt.s32.totalorder %s1789_s26, %s1782_s29 }
  0x4f   : > { %p1786_p13 = pneg %p1785_p10  ;;  %p1792_p9 = por %p1791_p7, %p1790_p3 }
  0x51   : > { %p1793_p1 = pnand %p1792_p9, %p1786_p13 }
  0x53   : > { %1796 = shalt.err (!%p1793_p1)
}
  0x54   : > { %s2971_s13 = smov 16   ;;  %s2972_s10 = smov 256  }
  0x55   : > { %1655 = dma.hbm_to_vmem [thread:$0]  (!%p2068_p11), %s2065_s11, 1024, %s2072_s15, %s2079_s23, %s2972_s10, %s2972_s10, %s2971_s13  }
  0x56   : > { %s278_s18 = scalar_lea.vmem [#allocation5], %s2060_s21  ;;  %s274_s17 = sand.u32 1, %s1901_s27  }
  0x57   : > { %s286_s20 = sshll.u32 %s278_s18, 4  ;;  %s2114_s14 = scalar_lea.sflag [#allocation6], %s274_s17  ;;  %s2112_s20 = int_to_ptr.vmem [resolvable:$true] %s286_s20 }
  0x58   : > { %s1797_s29 = scalar_lea.hbm %s2077_s22, 1024  ;;  %s1802_s26 = scalar_lea.hbm %s2919_s2, 2048 }
  0x59   : > { %p1798_p5 = scmp.ne.s32.totalorder %s2077_s22, %s1797_s29  ;;  %p1803_p6 = scmp.lt.u32.totalorder %s2077_s22, %s2919_s2 }
  0x5a   : > { %p1804_p8 = scmp.lt.u32.totalorder %s1802_s26, %s1797_s29  ;;  %p1806_p13 = scmp.lt.u32.totalorder %s1797_s29, %s2077_s22 }
  0x5b   : > { %p1800_p2 = pnand %p1798_p5, %p1769_p0 }
  0x5c   : > { %p1805_p10 = por %p1804_p8, %p1803_p6 }
  0x5d   : > { %p1801_p4 = pneg %p1800_p2 }
  0x5e   : > { %p1807_p3 = por %p1806_p13, %p1805_p10 }
  0x60   : > { %p1808_p7 = pnand %p1807_p3, %p1801_p4 }
  0x62   : > { %1811 = shalt.err (!%p1808_p7)
}
  0x63   : > { %s1812_s21 = scalar_lea.vmem %s2112_s20, 1024  ;;  %s1907_s11 = smov [#allocation5]  }
  0x64   : > { %p1813_p9 = scmp.ne.s32.totalorder %s2112_s20, %s1812_s21  ;;  %s1817_s15 = sshll.u32 %s1907_s11, 4  ;;  %s1818_s15 = int_to_ptr.vmem [resolvable:$false] %s1817_s15 }
  0x65   : > { %s1819_s1 = scalar_lea.vmem %s1818_s15, 2048  ;;  %p1820_p2 = scmp.lt.s32.totalorder %s2112_s20, %s1818_s15 }
  0x66   : > { %p1815_p1 = pnand %p1813_p9, %p1769_p0  ;;  %p1821_p6 = scmp.lt.s32.totalorder %s1819_s1, %s1812_s21 }
  0x68   : > { %p1816_p5 = pneg %p1815_p1  ;;  %p1822_p8 = por %p1821_p6, %p1820_p2 }
  0x6a   : > { %p1823_p10 = pnand %p1822_p8, %p1816_p5 }
  0x6c   : > { %1826 = shalt.err (!%p1823_p10)
}
  0x6d   : > { %1658 = dma.hbm_to_vmem [thread:$0]  (!%p2068_p11), %s2077_s22, 1024, %s2112_s20, %s2114_s14, %s2972_s10, %s2972_s10, %s2971_s13  }
  0x6e   : > { %p2973_p0 = scmp.ne.s32.totalorder %s2962_s9, 0 }
  0x70   : > { %298 = sbr.rel (%p2973_p0) target bundleno = 1803 (0x70b), region = 48 }
  0x77   : > { %s2146_s8 = sand.u32 1, %s1893_s25   ;;  %p2974_p4 = scmp.ne.s32.totalorder %s2959_s30, 0 }
  0x78   : > { %s2149_s23 = sshll.u32 %s2146_s8, 6  ;;  %s301_s16 = scalar_lea.sflag [#allocation3], %s2146_s8 }
  0x79   : > { %s2153_s18 = scalar_lea.vmem [#allocation2], %s2149_s23 }
  0x7a   : > { %1872 = dma.done.wait (%p2974_p4), %s301_s16, 1024  }
  0x7b   : > { %1874 = vsyncadd (%p2974_p4), %s301_s16, 4294966272  ;;  %s309_s9 = sand.u32 1, %s1981_s28   ;;  %s2161_s13 = scalar_lea.vmem [#allocation5], %s2149_s23 }
  0x7c   : > { %s310_s22 = scalar_lea.sflag [#allocation6], %s309_s9 }
  0x7d   : > { %1876 = dma.done.wait (%p2974_p4), %s310_s22, 1024  }
  0x7e   : > { %1878 = vsyncadd (%p2974_p4), %s310_s22, 4294966272  ;;  %p2975_p11 = scmp.eq.s32.totalorder %s1981_s28, 0 }
  0x80   : > { %1880 = dma.done.wait (%p2975_p11), [#allocation6], 1280   ;;  %p2976_p13 = pmov %p2975_p11 }
  0x81   : > { %v2172_v0 = vld [vmem:[%s2153_s18 + $0x8] sm:$0xff]  ;;  %v2175_v1 = vld [vmem:[%s2153_s18] sm:$0xff]  ;;  %s1908_s10 = smov 17   ;;  %v2182_v2 = vld [vmem:[%s2153_s18 + $0x18] sm:$0xff]  ;;  %s1909_s30 = smov 16   ;;  %vm613_vm0 = vcmask 261120   ;;  %v394_v11 = vlaneseq }
  0x82   : > { %1882 = vsyncadd (%p2976_p13), [#allocation6], 4294966016  ;;  %390 = vrot.lane.b32.xlu1 %v2172_v0, %s1908_s10  ;;  %386 = vrot.lane.b32.xlu0 %v2175_v1, %s1908_s10  ;;  %v2185_v3 = vld [vmem:[%s2153_s18 + $0x10] sm:$0xff]  ;;  %s1910_s20 = smov 15   ;;  %v1556_v4 = vpack.c.bf16 %v2182_v2, %v2172_v0  ;;  %s1911_s17 = smov 1   ;;  %v2247_v6 = vld [vmem:[#allocation7 + $0x8] sm:$0xff] }
  0x83   : > { %v1558_v5 = vpack.c.bf16 %v2185_v3, %v2175_v1  ;;  %s1912_s14 = smov 127   ;;  %s1913_s29 = smov 113   ;;  %1500 = vmatprep.mubr.msk.f32.mxu0 %vm613_vm0, %v2247_v6  ;;  %v370_v7 = vld [vmem:[%s2921_s4] sm:$0xff]  ;;  %v371_v8 = vld [vmem:[%s2921_s4 + $0x8] sm:$0xff]  ;;  %v1916_v9 = vmov 0   ;;  %v372_v10 = vld [vmem:[%s2921_s4 + $0x10] sm:$0xff] }
  0x84   : > { %s1914_s3 = smov 112   ;;  %s1915_s12 = smov 111   ;;  %1713 = vset.pattern.permute.xlu0 %v1916_v9  ;;  %1714 = vset.pattern.permute.xlu1 %v1916_v9  ;;  %v2264_v12 = vshrl.u32 %v394_v11, 7  ;;  %v2266_v13 = vand.u32 127, %v394_v11  ;;  %v2272_v15 = vld [vmem:[%s2917_s0] sm:$0xff]  ;;  %v2277_v16 = vld [vmem:[%s2917_s0 + $0x8] sm:$0xff] }
  0x85   : > { %vm728_vm9 = vcmask 130048   ;;  %vm805_vm10 = vcmask 64512   ;;  %s2837_s22 = scalar_lea.vmem [#allocation8], %s2149_s23  ;;  %s1539_s23 = sshll.u32 %s1981_s28, 10 }
  0x86   : > { %392 = vrot.lane.b32.xlu1 %v2182_v2, %s1908_s10  ;;  %388 = vrot.lane.b32.xlu0 %v2185_v3, %s1908_s10  ;;  %v403_v14 = vsub.s32 0, %v2264_v12  ;;  %vm396_vm1 = vcmp.lt.s32.totalorder %v2266_v13, 17  ;;  %v428_v27 = vsub.s32 1, %v2264_v12  ;;  %vm421_vm2 = vcmp.lt.s32.totalorder %v2266_v13, 16  ;;  %s1376_s26 = sshll.u32 %s2837_s22, 4  ;;  %s2864_s15 = scalar_lea.hbm %s2924_s7, %s1539_s23  ;;  %s2870_s26 = int_to_ptr.vmem [resolvable:$true] %s1376_s26 }
  0x87   : > { %v453_v40 = vsub.s32 2, %v2264_v12  ;;  %vm446_vm3 = vcmp.lt.s32.totalorder %v2266_v13, 15  ;;  %v478_v57 = vsub.s32 3, %v2264_v12  ;;  %vm471_vm4 = vcmp.lt.s32.totalorder %v2266_v13, 1  ;;  %s1362_s28 = scalar_lea.sflag [#allocation4], %s2146_s8  ;;  %s1827_s1 = scalar_lea.vmem %s2870_s26, 1024 }
  0x88   : > { %v2281_v19 = vrot.slane %v2272_v15, %v403_v14  ;;  %v2284_v20 = vrot.slane %v2277_v16, %v403_v14  ;;  %v2301_v36 = vrot.slane %v2272_v15, %v428_v27  ;;  %v2304_v37 = vrot.slane %v2277_v16, %v428_v27  ;;  %p1828_p3 = scmp.ne.s32.totalorder %s2870_s26, %s1827_s1  ;;  %s1918_s16 = smov [#allocation8]  }
  0x89   : > { %v2321_v53 = vrot.slane %v2272_v15, %v453_v40  ;;  %v2324_v54 = vrot.slane %v2277_v16, %v453_v40  ;;  %vm496_vm5 = vcmp.lt.s32.totalorder %v2266_v13, 127  ;;  %vm521_vm6 = vcmp.lt.s32.totalorder %v2266_v13, 113 }
  0x8a   : > { %415 = vrot.lane.b32.xlu1 %v2185_v3, %s1909_s30  ;;  %413 = vrot.lane.b32.xlu0 %v2175_v1, %s1909_s30  ;;  %vm546_vm7 = vcmp.lt.s32.totalorder %v2266_v13, 112  ;;  %vm571_vm8 = vcmp.lt.s32.totalorder %v2266_v13, 111  ;;  %p1829_p7 = pnand %p1828_p3, %p2054_p12 }
  0x8c   : > { %p1830_p9 = pneg %p1829_p7 }
  0x8e   : > { %419 = vrot.lane.b32.xlu1 %v2182_v2, %s1909_s30  ;;  %417 = vrot.lane.b32.xlu0 %v2172_v0, %s1909_s30 }
  0x92   : > { %440 = vrot.lane.b32.xlu1 %v2185_v3, %s1910_s20  ;;  %438 = vrot.lane.b32.xlu0 %v2175_v1, %s1910_s20 }
  0x96   : > { %444 = vrot.lane.b32.xlu1 %v2182_v2, %s1910_s20  ;;  %442 = vrot.lane.b32.xlu0 %v2172_v0, %s1910_s20 }
  0x9a   : > { %465 = vrot.lane.b32.xlu1 %v2185_v3, %s1911_s17  ;;  %463 = vrot.lane.b32.xlu0 %v2175_v1, %s1911_s17 }
  0x9e   : > { %469 = vrot.lane.b32.xlu1 %v2182_v2, %s1911_s17  ;;  %467 = vrot.lane.b32.xlu0 %v2172_v0, %s1911_s17 }
  0xa2   : > { %490 = vrot.lane.b32.xlu1 %v2185_v3, %s1912_s14  ;;  %488 = vrot.lane.b32.xlu0 %v2175_v1, %s1912_s14 }
  0xa6   : > { %494 = vrot.lane.b32.xlu1 %v2182_v2, %s1912_s14  ;;  %492 = vrot.lane.b32.xlu0 %v2172_v0, %s1912_s14 }
  0xaa   : > { %515 = vrot.lane.b32.xlu1 %v2185_v3, %s1913_s29  ;;  %513 = vrot.lane.b32.xlu0 %v2175_v1, %s1913_s29 }
  0xae   : > { %519 = vrot.lane.b32.xlu1 %v2182_v2, %s1913_s29  ;;  %517 = vrot.lane.b32.xlu0 %v2172_v0, %s1913_s29 }
  0xb2   : > { %540 = vrot.lane.b32.xlu1 %v2185_v3, %s1914_s3  ;;  %538 = vrot.lane.b32.xlu0 %v2175_v1, %s1914_s3 }
  0xb6   : > { %544 = vrot.lane.b32.xlu1 %v2182_v2, %s1914_s3  ;;  %542 = vrot.lane.b32.xlu0 %v2172_v0, %s1914_s3 }
  0xba   : > { %565 = vrot.lane.b32.xlu1 %v2185_v3, %s1915_s12  ;;  %563 = vrot.lane.b32.xlu0 %v2175_v1, %s1915_s12 }
  0xbe   : > { %569 = vrot.lane.b32.xlu1 %v2182_v2, %s1915_s12  ;;  %567 = vrot.lane.b32.xlu0 %v2172_v0, %s1915_s12 }
  0xc2   : > { %590 = vperm.xlu0 %1713, %v370_v7   ;;  %595 = vperm.xlu1 %1714, %v371_v8  }
  0xc6   : > { %600 = vperm.xlu1 %1714, %v372_v10  }
  0xf4   : > { %v391_v17 = vpop.permute.xlu1 %390  ;;  %v387_v18 = vpop.permute.xlu0 %386 }
  0xf5   : > { %v397_v21 = vsel %vm396_vm1, %v387_v18, %v391_v17  ;;  %v399_v22 = vsel %vm396_vm1, %v391_v17, %v387_v18  ;;  %v2341_v17 = vrot.slane %v2272_v15, %v478_v57  ;;  %v2344_v18 = vrot.slane %v2277_v16, %v478_v57 }
  0xf6   : > { %v409_v28 = vmul.f32 %v2281_v19, %v399_v22  ;;  %v410_v30 = vmul.f32 %v2284_v20, %v397_v21 }
  0xf8   : > { %v393_v23 = vpop.permute.xlu1 %392  ;;  %v389_v24 = vpop.permute.xlu0 %388 }
  0xf9   : > { %v398_v25 = vsel %vm396_vm1, %v389_v24, %v393_v23  ;;  %v400_v26 = vsel %vm396_vm1, %v393_v23, %v389_v24  ;;  %v503_v23 = vsub.s32 5, %v2264_v12 }
  0xfa   : > { %v411_v29 = vmul.f32 %v2281_v19, %v400_v26  ;;  %v412_v31 = vmul.f32 %v2284_v20, %v398_v25 }
  0xfc   : > { %v416_v32 = vpop.permute.xlu1 %415  ;;  %v414_v33 = vpop.permute.xlu0 %413  ;;  %v1540_v34 = vpack.c.bf16 %v412_v31, %v410_v30  ;;  %v1542_v35 = vpack.c.bf16 %v411_v29, %v409_v28 }
  0xfe   : > { %1541 = vmatprep.subr.bf16.mxu0 %v1540_v34 }
  0xff   : > { %1543 = vmatpush1.bf16.msra.mxu0 %v1542_v35 }
 0x100   : > { %v420_v38 = vpop.permute.xlu1 %419  ;;  %v418_v39 = vpop.permute.xlu0 %417 }
 0x101   : > { %v423_v41 = vsel %vm421_vm2, %v416_v32, %v420_v38  ;;  %v425_v42 = vsel %vm421_vm2, %v420_v38, %v416_v32  ;;  %v422_v43 = vsel %vm421_vm2, %v414_v33, %v418_v39  ;;  %v424_v44 = vsel %vm421_vm2, %v418_v39, %v414_v33 }
 0x102   : > { %v436_v45 = vmul.f32 %v2301_v36, %v425_v42  ;;  %v437_v46 = vmul.f32 %v2304_v37, %v423_v41  ;;  %v434_v47 = vmul.f32 %v2301_v36, %v424_v44  ;;  %v435_v48 = vmul.f32 %v2304_v37, %v422_v43 }
 0x103   : > { %v2361_v38 = vrot.slane %v2272_v15, %v503_v23  ;;  %v2364_v39 = vrot.slane %v2277_v16, %v503_v23  ;;  %v528_v42 = vsub.s32 6, %v2264_v12 }
 0x104   : > { %v441_v49 = vpop.permute.xlu1 %440  ;;  %v439_v50 = vpop.permute.xlu0 %438  ;;  %v1544_v51 = vpack.c.bf16 %v437_v46, %v435_v48  ;;  %v1546_v52 = vpack.c.bf16 %v436_v45, %v434_v47 }
 0x106   : > { %1545 = vmatprep.subr.bf16.mxu0 %v1544_v51 }
 0x107   : > { %1547 = vmatpush1.bf16.msra.mxu0 %v1546_v52  ;;  %v2387_v52 = vrot.slane %v2272_v15, %v528_v42 }
 0x108   : > { %v445_v55 = vpop.permute.xlu1 %444  ;;  %v443_v56 = vpop.permute.xlu0 %442 }
 0x109   : > { %v448_v58 = vsel %vm446_vm3, %v441_v49, %v445_v55  ;;  %v450_v59 = vsel %vm446_vm3, %v445_v55, %v441_v49  ;;  %v447_v60 = vsel %vm446_vm3, %v439_v50, %v443_v56  ;;  %v449_v61 = vsel %vm446_vm3, %v443_v56, %v439_v50 }
 0x10a   : > { %v461_v62 = vmul.f32 %v2321_v53, %v450_v59  ;;  %v462_v63 = vmul.f32 %v2324_v54, %v448_v58  ;;  %v459_v7 = vmul.f32 %v2321_v53, %v449_v61  ;;  %v460_v8 = vmul.f32 %v2324_v54, %v447_v60 }
 0x10b   : > { %v2390_v55 = vrot.slane %v2277_v16, %v528_v42  ;;  %v553_v58 = vsub.s32 7, %v2264_v12 }
 0x10c   : > { %v466_v9 = vpop.permute.xlu1 %465  ;;  %v464_v10 = vpop.permute.xlu0 %463  ;;  %v1548_v11 = vpack.c.bf16 %v462_v63, %v460_v8  ;;  %v1550_v14 = vpack.c.bf16 %v461_v62, %v459_v7 }
 0x10e   : > { %1549 = vmatprep.subr.bf16.mxu0 %v1548_v11  ;;  %v2410_v11 = vrot.slane %v2277_v16, %v553_v58 }
 0x10f   : > { %1551 = vmatpush1.bf16.msra.mxu0 %v1550_v14 }
 0x110   : > { %v470_v21 = vpop.permute.xlu1 %469  ;;  %v468_v22 = vpop.permute.xlu0 %467 }
 0x111   : > { %v473_v24 = vsel %vm471_vm4, %v466_v9, %v470_v21  ;;  %v475_v25 = vsel %vm471_vm4, %v470_v21, %v466_v9  ;;  %v472_v26 = vsel %vm471_vm4, %v464_v10, %v468_v22  ;;  %v474_v27 = vsel %vm471_vm4, %v468_v22, %v464_v10 }
 0x112   : > { %v486_v28 = vmul.f32 %v2341_v17, %v475_v25  ;;  %v487_v29 = vmul.f32 %v2344_v18, %v473_v24  ;;  %v484_v30 = vmul.f32 %v2341_v17, %v474_v27  ;;  %v485_v31 = vmul.f32 %v2344_v18, %v472_v26 }
 0x113   : > { %v2407_v10 = vrot.slane %v2272_v15, %v553_v58  ;;  %v2453_v58 = vld [vmem:[#allocation7 + $0x18] sm:$0xff] }
 0x114   : > { %v491_v32 = vpop.permute.xlu1 %490  ;;  %v489_v33 = vpop.permute.xlu0 %488  ;;  %v1552_v34 = vpack.c.bf16 %v487_v29, %v485_v31  ;;  %v1554_v35 = vpack.c.bf16 %v486_v28, %v484_v30 }
 0x116   : > { %1553 = vmatprep.subr.bf16.mxu0 %v1552_v34 }
 0x117   : > { %1555 = vmatpush1.bf16.msra.mxu0 %v1554_v35 }
 0x118   : > { %v495_v40 = vpop.permute.xlu1 %494  ;;  %v493_v41 = vpop.permute.xlu0 %492  ;;  %1557 = vmatprep.subr.bf16.mxu0 %v1556_v4 }
 0x119   : > { %v498_v43 = vsel %vm496_vm5, %v491_v32, %v495_v40  ;;  %v500_v44 = vsel %vm496_vm5, %v495_v40, %v491_v32  ;;  %v497_v45 = vsel %vm496_vm5, %v489_v33, %v493_v41  ;;  %v499_v46 = vsel %vm496_vm5, %v493_v41, %v489_v33  ;;  %v2428_v32 = vld [vmem:[%s2917_s0 + $0x10] ss:$0 sm:$0xff]  ;;  %v2433_v33 = vld [vmem:[%s2917_s0 + $0x18] ss:$0 sm:$0xff] }
 0x11a   : > { %v511_v47 = vmul.f32 %v2361_v38, %v498_v43  ;;  %v512_v48 = vmul.f32 %v2364_v39, %v500_v44  ;;  %v509_v0 = vmul.f32 %v2361_v38, %v497_v45  ;;  %v510_v2 = vmul.f32 %v2364_v39, %v499_v46  ;;  %v383_v44 = vld [vmem:[%s2161_s13 + $0x8] sm:$0xff]  ;;  %v385_v45 = vld [vmem:[%s2161_s13 + $0x18] sm:$0xff] }
 0x11b   : > { %1559 = vmatpush1.bf16.msra.mxu0 %v1558_v5 }
 0x11c   : > { %v516_v4 = vpop.permute.xlu1 %515  ;;  %v514_v49 = vpop.permute.xlu0 %513  ;;  %v1560_v50 = vpack.c.bf16 %v512_v48, %v510_v2  ;;  %v1562_v51 = vpack.c.bf16 %v511_v47, %v509_v0 }
 0x11e   : > { %1561 = vmatprep.subr.bf16.mxu0 %v1560_v50  ;;  %v382_v50 = vld [vmem:[%s2161_s13] sm:$0xff] }
 0x11f   : > { %1563 = vmatpush1.bf16.msra.mxu0 %v1562_v51  ;;  %v384_v51 = vld [vmem:[%s2161_s13 + $0x10] sm:$0xff] }
 0x120   : > { %v520_v56 = vpop.permute.xlu1 %519  ;;  %v518_v57 = vpop.permute.xlu0 %517 }
 0x121   : > { %v523_v1 = vsel %vm521_vm6, %v516_v4, %v520_v56  ;;  %v525_v3 = vsel %vm521_vm6, %v520_v56, %v516_v4  ;;  %v522_v5 = vsel %vm521_vm6, %v514_v49, %v518_v57  ;;  %v524_v59 = vsel %vm521_vm6, %v518_v57, %v514_v49  ;;  %v2451_v57 = vld [vmem:[#allocation7] sm:$0xff] }
 0x122   : > { %v536_v60 = vmul.f32 %v2387_v52, %v523_v1  ;;  %v537_v61 = vmul.f32 %v2390_v55, %v525_v3  ;;  %v534_v62 = vmul.f32 %v2387_v52, %v522_v5  ;;  %v535_v12 = vmul.f32 %v2390_v55, %v524_v59  ;;  %v2458_v1 = vld [vmem:[#allocation7 + $0x10] sm:$0xff]  ;;  %v2461_v3 = vld [vmem:[#allocation7 + $0x28] sm:$0xff]  ;;  %v2465_v5 = vld [vmem:[#allocation7 + $0x20] sm:$0xff] }
 0x123   : > { %v1576_v49 = vpack.c.bf16 %v385_v45, %v383_v44  ;;  %v1578_v56 = vpack.c.bf16 %v384_v51, %v382_v50  ;;  %v2468_v59 = vld [vmem:[#allocation7 + $0x38] sm:$0xff] }
 0x124   : > { %v541_v63 = vpop.permute.xlu1 %540  ;;  %v539_v7 = vpop.permute.xlu0 %538  ;;  %v1564_v8 = vpack.c.bf16 %v537_v61, %v535_v12  ;;  %v1566_v9 = vpack.c.bf16 %v536_v60, %v534_v62  ;;  %v2472_v60 = vld [vmem:[#allocation7 + $0x30] sm:$0xff]  ;;  %v2475_v61 = vld [vmem:[#allocation7 + $0x48] sm:$0xff]  ;;  %v2479_v62 = vld [vmem:[#allocation7 + $0x40] sm:$0xff]  ;;  %v2940_v12 = vmov 0.0  }
 0x125   : > { %2977 = vst [vmem:[#allocation17_spill] sm:$0xff] %v2472_v60  ;;  %2978 = vst [vmem:[#allocation18_spill] sm:$0xff] %v2475_v61  ;;  %876 = vmatprep.mubr.f32.mxu1 %v2940_v12 }
 0x126   : > { %1565 = vmatprep.subr.bf16.mxu0 %v1564_v8  ;;  %2979 = vst [vmem:[#allocation19_spill] sm:$0xff] %v2479_v62  ;;  %v2495_v8 = vld [vmem:[%s2153_s18 + $0x38] sm:$0xff] }
 0x127   : > { %1567 = vmatpush1.bf16.msra.mxu0 %v1566_v9  ;;  %v2498_v9 = vld [vmem:[%s2153_s18 + $0x28] sm:$0xff] }
 0x128   : > { %v545_v14 = vpop.permute.xlu1 %544  ;;  %v543_v21 = vpop.permute.xlu0 %542 }
 0x129   : > { %v548_v22 = vsel %vm546_vm7, %v541_v63, %v545_v14  ;;  %v550_v23 = vsel %vm546_vm7, %v545_v14, %v541_v63  ;;  %v547_v24 = vsel %vm546_vm7, %v539_v7, %v543_v21  ;;  %v549_v25 = vsel %vm546_vm7, %v543_v21, %v539_v7  ;;  %v2485_v63 = vld [vmem:[%s2153_s18 + $0x30] sm:$0xff]  ;;  %v2488_v7 = vld [vmem:[%s2153_s18 + $0x20] sm:$0xff]  ;;  %s1831_s18 = sshll.u32 %s1918_s16, 4  ;;  %s1832_s18 = int_to_ptr.vmem [resolvable:$false] %s1831_s18 }
 0x12a   : > { %v561_v15 = vmul.f32 %v2407_v10, %v548_v22  ;;  %v562_v16 = vmul.f32 %v2410_v11, %v550_v23  ;;  %v559_v26 = vmul.f32 %v2407_v10, %v547_v24  ;;  %v560_v27 = vmul.f32 %v2410_v11, %v549_v25  ;;  %943 = vrot.lane.b32.xlu1 %v2485_v63, %s1908_s10  ;;  %p1834_p1 = scmp.lt.s32.totalorder %s2870_s26, %s1832_s18 }
 0x12b   : > { %941 = vrot.lane.b32.xlu0 %v2488_v7, %s1908_s10 }
 0x12c   : > { %v566_v28 = vpop.permute.xlu1 %565  ;;  %v564_v29 = vpop.permute.xlu0 %563  ;;  %v1568_v30 = vpack.c.bf16 %v562_v16, %v560_v27  ;;  %v1570_v31 = vpack.c.bf16 %v561_v15, %v559_v26 }
 0x12e   : > { %1569 = vmatprep.subr.bf16.mxu0 %v1568_v30  ;;  %947 = vrot.lane.b32.xlu1 %v2495_v8, %s1908_s10 }
 0x12f   : > { %1571 = vmatpush1.bf16.msra.mxu0 %v1570_v31  ;;  %945 = vrot.lane.b32.xlu0 %v2498_v9, %s1908_s10  ;;  %s1833_s10 = scalar_lea.vmem %s1832_s18, 2048 }
 0x130   : > { %v570_v34 = vpop.permute.xlu1 %569  ;;  %v568_v35 = vpop.permute.xlu0 %567  ;;  %p1835_p5 = scmp.lt.s32.totalorder %s1833_s10, %s1827_s1 }
 0x131   : > { %v573_v40 = vsel %vm571_vm8, %v566_v28, %v570_v34  ;;  %v575_v41 = vsel %vm571_vm8, %v570_v34, %v566_v28  ;;  %v572_v42 = vsel %vm571_vm8, %v564_v29, %v568_v35  ;;  %v574_v43 = vsel %vm571_vm8, %v568_v35, %v564_v29 }
 0x132   : > { %v586_v46 = vmul.f32 %v2428_v32, %v573_v40  ;;  %v587_v47 = vmul.f32 %v2433_v33, %v575_v41  ;;  %v584_v48 = vmul.f32 %v2428_v32, %v572_v42  ;;  %v585_v0 = vmul.f32 %v2433_v33, %v574_v43  ;;  %959 = vrot.lane.b32.xlu1 %v2485_v63, %s1909_s30  ;;  %v2591_v40 = vld [vmem:[%s2922_s5] sm:$0xff]  ;;  %p1836_p2 = por %p1835_p5, %p1834_p1 }
 0x133   : > { %957 = vrot.lane.b32.xlu0 %v2488_v7, %s1909_s30  ;;  %2986 = vst [vmem:[#allocation26_spill] sm:$0xff] %v2591_v40 }
 0x134   : > { %v1572_v2 = vpack.c.bf16 %v587_v47, %v585_v0  ;;  %v1574_v4 = vpack.c.bf16 %v586_v46, %v584_v48  ;;  %p1837_p6 = pnand %p1836_p2, %p1830_p9 }
 0x136   : > { %1573 = vmatprep.subr.bf16.mxu0 %v1572_v2  ;;  %963 = vrot.lane.b32.xlu1 %v2495_v8, %s1909_s30 }
 0x137   : > { %1575 = vmatpush1.bf16.msra.mxu0 %v1574_v4  ;;  %961 = vrot.lane.b32.xlu0 %v2498_v9, %s1909_s30 }
 0x138   : > { %1577 = vmatprep.subr.bf16.mxu0 %v1576_v49 }
 0x13a   : > { %975 = vrot.lane.b32.xlu1 %v2485_v63, %s1910_s20 }
 0x13b   : > { %1579 = vmatpush1.bf16.msra.mxu0 %v1578_v56  ;;  %973 = vrot.lane.b32.xlu0 %v2488_v7, %s1910_s20 }
 0x13e   : > { %694 = vmatmul.mubr.f32.vlgmr.msra.gmra.mrb[0].mxu0 %v2451_v57  ;;  %979 = vrot.lane.b32.xlu1 %v2495_v8, %s1910_s20 }
 0x13f   : > { %1501 = vmatprep.mubr.msk.f32.mxu0 %vm613_vm0, %v2453_v58  ;;  %977 = vrot.lane.b32.xlu0 %v2498_v9, %s1910_s20 }
 0x141   : > { %v2560_v21 = vpop.permute.xlu0 %590  ;;  %v2562_v23 = vpop.permute.xlu1 %595 }
 0x142   : > { %700 = vmatmul.mubr.f32.gmra.mrb[2].mxu0 %v2458_v1  ;;  %991 = vrot.lane.b32.xlu1 %v2485_v63, %s1911_s17  ;;  %2980 = vst [vmem:[#allocation20_spill] sm:$0xff] %v2560_v21  ;;  %2981 = vst [vmem:[#allocation21_spill] sm:$0xff] %v2562_v23 }
 0x143   : > { %1502 = vmatprep.mubr.msk.f32.mxu0 %vm613_vm0, %v2461_v3  ;;  %989 = vrot.lane.b32.xlu0 %v2488_v7, %s1911_s17 }
 0x145   : > { %v2604_v45 = vpop.permute.xlu1 %600 }
 0x146   : > { %706 = vmatmul.mubr.f32.gmra.mrb[4].mxu0 %v2465_v5  ;;  %995 = vrot.lane.b32.xlu1 %v2495_v8, %s1911_s17  ;;  %2991 = vst [vmem:[#allocation31_spill] sm:$0xff] %v2604_v45 }
 0x147   : > { %1503 = vmatprep.mubr.msk.f32.mxu0 %vm613_vm0, %v2468_v59  ;;  %993 = vrot.lane.b32.xlu0 %v2498_v9, %s1911_s17 }
 0x14a   : > { %712 = vmatmul.mubr.f32.gmra.mrb[6].mxu0 %v2472_v60  ;;  %1007 = vrot.lane.b32.xlu1 %v2485_v63, %s1912_s14 }
 0x14b   : > { %1504 = vmatprep.mubr.msk.f32.mxu0 %vm613_vm0, %v2475_v61  ;;  %1005 = vrot.lane.b32.xlu0 %v2488_v7, %s1912_s14 }
 0x14e   : > { %718 = vmatmul.mubr.f32.gmra.mrb[8].mxu0 %v2479_v62  ;;  %1011 = vrot.lane.b32.xlu1 %v2495_v8, %s1912_s14 }
 0x14f   : > { %796 = vmatprep.mubr.f32.mxu0 %v2940_v12  ;;  %1009 = vrot.lane.b32.xlu0 %v2498_v9, %s1912_s14 }
 0x152   : > { %1023 = vrot.lane.b32.xlu1 %v2485_v63, %s1913_s29 }
 0x153   : > { %1021 = vrot.lane.b32.xlu0 %v2488_v7, %s1913_s29 }
 0x156   : > { %1027 = vrot.lane.b32.xlu1 %v2495_v8, %s1913_s29 }
 0x157   : > { %1025 = vrot.lane.b32.xlu0 %v2498_v9, %s1913_s29 }
 0x15a   : > { %1039 = vrot.lane.b32.xlu1 %v2485_v63, %s1914_s3 }
 0x15b   : > { %1037 = vrot.lane.b32.xlu0 %v2488_v7, %s1914_s3 }
 0x15e   : > { %1043 = vrot.lane.b32.xlu1 %v2495_v8, %s1914_s3 }
 0x15f   : > { %1041 = vrot.lane.b32.xlu0 %v2498_v9, %s1914_s3 }
 0x162   : > { %1055 = vrot.lane.b32.xlu1 %v2485_v63, %s1915_s12 }
 0x163   : > { %1053 = vrot.lane.b32.xlu0 %v2488_v7, %s1915_s12 }
 0x166   : > { %1059 = vrot.lane.b32.xlu1 %v2495_v8, %s1915_s12 }
 0x167   : > { %1057 = vrot.lane.b32.xlu0 %v2498_v9, %s1915_s12 }
 0x19c   : > { %v944_v46 = vpop.permute.xlu1 %943 }
 0x19d   : > { %v942_v47 = vpop.permute.xlu0 %941 }
 0x1a0   : > { %v948_v48 = vpop.permute.xlu1 %947 }
 0x1a1   : > { %v946_v0 = vpop.permute.xlu0 %945 }
 0x1a4   : > { %v960_v2 = vpop.permute.xlu1 %959 }
 0x1a5   : > { %v958_v4 = vpop.permute.xlu0 %957 }
 0x1a8   : > { %v964_v49 = vpop.permute.xlu1 %963 }
 0x1a9   : > { %v962_v50 = vpop.permute.xlu0 %961  ;;  %v968_v60 = vsel %vm421_vm2, %v964_v49, %v960_v2 }
 0x1ac   : > { %v976_v51 = vpop.permute.xlu1 %975 }
 0x1ad   : > { %v974_v56 = vpop.permute.xlu0 %973 }
 0x211   : > { %v695_v14 = vpop.f32.mrb[0].mxu0 }
 0x212   : > { %v697_v22 = vpop.f32.mrb[1].mxu0  ;;  %v2568_v15 = vadd.f32 %v695_v14, %v2560_v21  ;;  %v980_v14 = vpop.permute.xlu1 %979 }
 0x213   : > { %v2565_v24 = vadd.f32 %v697_v22, %v2560_v21  ;;  %v978_v22 = vpop.permute.xlu0 %977 }
 0x214   : > { %2983 = vst [vmem:[#allocation23_spill] sm:$0xff] %v2568_v15  ;;  %v2939_v31 = vmax.f32 %v2568_v15, 0.0 }
 0x215   : > { %2982 = vst [vmem:[#allocation22_spill] sm:$0xff] %v2565_v24  ;;  %v701_v25 = vpop.f32.mrb[2].mxu0  ;;  %v2938_v29 = vmax.f32 %v2565_v24, 0.0  ;;  %v951_v24 = vsel %vm396_vm1, %v946_v0, %v942_v47 }
 0x216   : > { %v2571_v16 = vadd.f32 %v701_v25, %v2562_v23  ;;  %v703_v26 = vpop.f32.mrb[3].mxu0  ;;  %v992_v25 = vpop.permute.xlu1 %991 }
 0x217   : > { %v2574_v27 = vadd.f32 %v703_v26, %v2562_v23  ;;  %v990_v26 = vpop.permute.xlu0 %989 }
 0x218   : > { %2984 = vst [vmem:[#allocation24_spill] sm:$0xff] %v2571_v16  ;;  %v2937_v28 = vmax.f32 %v2571_v16, 0.0  ;;  %v950_v16 = vsel %vm396_vm1, %v944_v46, %v948_v48 }
 0x219   : > { %2985 = vst [vmem:[#allocation25_spill] sm:$0xff] %v2574_v27  ;;  %v2936_v30 = vmax.f32 %v2574_v27, 0.0  ;;  %v956_v21 = vmul.f32 %v950_v16, %v2284_v20 }
 0x21a   : > { %v1582_v35 = vpack.c.bf16 %v2937_v28, %v2939_v31 }
 0x21b   : > { %v1580_v34 = vpack.c.bf16 %v2936_v30, %v2938_v29 }
 0x21d   : > { %1581 = vmatprep.subr.bf16.mxu0 %v1580_v34  ;;  %v2596_v41 = vpop.f32.mrb[6].mxu0  ;;  %v996_v34 = vpop.permute.xlu1 %995 }
 0x21e   : > { %1583 = vmatpush1.bf16.msra.mxu0 %v1582_v35  ;;  %2987 = vst [vmem:[#allocation27_spill] sm:$0xff] %v2596_v41  ;;  %v2598_v42 = vpop.f32.mrb[7].mxu0  ;;  %v994_v35 = vpop.permute.xlu0 %993  ;;  %v965_v41 = vsel %vm421_vm2, %v958_v4, %v962_v50 }
 0x21f   : > { %2988 = vst [vmem:[#allocation28_spill] sm:$0xff] %v2598_v42  ;;  %v966_v42 = vsel %vm421_vm2, %v960_v2, %v964_v49  ;;  %v983_v2 = vsel %vm446_vm3, %v978_v22, %v974_v56 }
 0x220   : > { %v972_v16 = vmul.f32 %v966_v42, %v2304_v37 }
 0x221   : > { %1505 = vmatmul.mubr.msk.f32.vlgmr.msra.gmra.mrb[4].mxu0 %vm728_vm9, %v2591_v40  ;;  %v2600_v43 = vpop.f32.mrb[8].mxu0  ;;  %v2606_v30 = vpop.permute.xlu1 %1007 }
 0x222   : > { %1305 = vmatprep.mubr.f32.mxu0 %v2940_v12  ;;  %2989 = vst [vmem:[#allocation29_spill] sm:$0xff] %v2600_v43  ;;  %v2602_v44 = vpop.f32.mrb[9].mxu0  ;;  %v2608_v28 = vpop.permute.xlu0 %1005  ;;  %v952_v43 = vsel %vm396_vm1, %v948_v48, %v944_v46 }
 0x223   : > { %2990 = vst [vmem:[#allocation30_spill] sm:$0xff] %v2602_v44  ;;  %v949_v44 = vsel %vm396_vm1, %v942_v47, %v946_v0  ;;  %v955_v47 = vmul.f32 %v952_v43, %v2281_v19  ;;  %v953_v0 = vmul.f32 %v951_v24, %v2281_v19  ;;  %v2653_v19 = vld [vmem:[%s2923_s6] sm:$0xff]  ;;  %v971_v24 = vmul.f32 %v968_v60, %v2301_v36 }
 0x224   : > { %v954_v62 = vmul.f32 %v949_v44, %v2284_v20  ;;  %v970_v20 = vmul.f32 %v965_v41, %v2304_v37  ;;  %v984_v41 = vsel %vm446_vm3, %v980_v14, %v976_v51 }
 0x225   : > { %v2610_v29 = vpop.permute.xlu1 %1011 }
 0x226   : > { %v2612_v31 = vpop.permute.xlu0 %1009  ;;  %v1584_v37 = vpack.c.bf16 %v956_v21, %v954_v62  ;;  %v1588_v60 = vpack.c.bf16 %v972_v16, %v970_v20  ;;  %v998_v62 = vsel %vm471_vm4, %v992_v25, %v996_v34  ;;  %v997_v21 = vsel %vm471_vm4, %v990_v26, %v994_v35 }
 0x229   : > { %v2614_v12 = vpop.permute.xlu1 %1023 }
 0x22a   : > { %v2616_v27 = vpop.permute.xlu0 %1021 }
 0x22d   : > { %v2634_v46 = vpop.permute.xlu1 %1027 }
 0x22e   : > { %v2636_v48 = vpop.permute.xlu0 %1025 }
 0x232   : > { %v1038_v49 = vpop.permute.xlu0 %1037 }
 0x2f4   : > { %v798_v15 = vpop.f32.mrb[4].mxu0 }
 0x2f5   : > { %v1630_v40 = vadd.f32 %v798_v15, %v2604_v45  ;;  %v800_v23 = vpop.f32.mrb[5].mxu0  ;;  %v967_v15 = vsel %vm421_vm2, %v962_v50, %v958_v4  ;;  %v2992_v50 = vmov 0.0  }
 0x2f6   : > { %v1631_v61 = vadd.f32 %v800_v23, %v2604_v45  ;;  %v982_v23 = vsel %vm446_vm3, %v976_v51, %v980_v14  ;;  %v981_v45 = vsel %vm446_vm3, %v974_v56, %v978_v22  ;;  %v969_v42 = vmul.f32 %v967_v15, %v2301_v36  ;;  %v1040_v36 = vpop.permute.xlu1 %1039 }
 0x2f7   : > { %v803_v43 = vmax.f32 %v1630_v40, 0.0  ;;  %v988_v40 = vmul.f32 %v982_v23, %v2324_v54  ;;  %v986_v4 = vmul.f32 %v981_v45, %v2324_v54  ;;  %v2673_v54 = vld [vmem:[%s2923_s6 + $0x8] sm:$0xff]  ;;  %v987_v51 = vmul.f32 %v984_v41, %v2321_v53 }
 0x2f8   : > { %v804_v44 = vmax.f32 %v1631_v61, 0.0  ;;  %v1586_v61 = vpack.c.bf16 %v955_v47, %v953_v0  ;;  %v1590_v45 = vpack.c.bf16 %v971_v24, %v969_v42  ;;  %v985_v56 = vmul.f32 %v983_v2, %v2321_v53 }
 0x2f9   : > { %v1000_v14 = vsel %vm471_vm4, %v996_v34, %v992_v25  ;;  %v999_v22 = vsel %vm471_vm4, %v994_v35, %v990_v26  ;;  %v1004_v47 = vmul.f32 %v998_v62, %v2344_v18  ;;  %v1002_v0 = vmul.f32 %v997_v21, %v2344_v18  ;;  %v1042_v34 = vpop.permute.xlu0 %1041 }
 0x2fa   : > { %812 = vmatprep.subr.mxu1 %v804_v44  ;;  %v1592_v15 = vpack.c.bf16 %v988_v40, %v986_v4  ;;  %v1003_v53 = vmul.f32 %v1000_v14, %v2341_v17  ;;  %v1001_v16 = vmul.f32 %v999_v22, %v2341_v17  ;;  %v1044_v25 = vpop.permute.xlu1 %1043  ;;  %v1594_v26 = vpack.c.bf16 %v987_v51, %v985_v56 }
 0x2fb   : > { %813 = vmatpush1.msra.mxu1 %v803_v43  ;;  %v1016_v18 = vsel %vm496_vm5, %v2610_v29, %v2606_v30  ;;  %v1015_v35 = vsel %vm496_vm5, %v2612_v31, %v2608_v28  ;;  %v1596_v20 = vpack.c.bf16 %v1004_v47, %v1002_v0  ;;  %v1600_v17 = vpack.c.bf16 %v2495_v8, %v2498_v9 }
 0x2fc   : > { %1506 = vmatmul.mubr.msk.f32.vlgmr.msra.gmra.mrb[0].mxu1 %vm805_vm10, %v2653_v19  ;;  %1585 = vmatprep.subr.bf16.mxu1 %v1584_v37  ;;  %v1014_v44 = vsel %vm496_vm5, %v2606_v30, %v2610_v29  ;;  %v1020_v23 = vmul.f32 %v1016_v18, %v2364_v39  ;;  %v1013_v43 = vsel %vm496_vm5, %v2608_v28, %v2612_v31 }
 0x2fd   : > { %1587 = vmatpush1.bf16.msra.mxu1 %v1586_v61  ;;  %882 = vmatprep.mubr.f32.mxu1 %v2992_v50  ;;  %v1018_v24 = vmul.f32 %v1015_v35, %v2364_v39  ;;  %v1054_v37 = vpop.permute.xlu0 %1053  ;;  %v1032_v8 = vsel %vm521_vm6, %v2634_v46, %v2614_v12  ;;  %v1031_v9 = vsel %vm521_vm6, %v2636_v48, %v2616_v27  ;;  %v2995_v35 = vld [vmem:[#allocation19_spill] sm:$0xff] }
 0x2fe   : > { %1589 = vmatprep.subr.bf16.mxu1 %v1588_v60  ;;  %v1056_v42 = vpop.permute.xlu1 %1055  ;;  %v1602_v29 = vpack.c.bf16 %v2485_v63, %v2488_v7  ;;  %v1019_v28 = vmul.f32 %v1014_v44, %v2361_v38  ;;  %v1017_v39 = vmul.f32 %v1013_v43, %v2361_v38  ;;  %v1030_v30 = vsel %vm521_vm6, %v2614_v12, %v2634_v46 }
 0x2ff   : > { %v1029_v31 = vsel %vm521_vm6, %v2616_v27, %v2636_v48  ;;  %v1604_v61 = vpack.c.bf16 %v1020_v23, %v1018_v24  ;;  %v1036_v41 = vmul.f32 %v1032_v8, %v2390_v55  ;;  %v1034_v63 = vmul.f32 %v1031_v9, %v2390_v55  ;;  %v2997_v24 = vld [vmem:[#allocation21_spill] sm:$0xff] }
 0x300   : > { %1507 = vmatmul.mubr.msk.f32.gmra.mrb[2].mxu1 %vm805_vm10, %v2673_v54  ;;  %v1048_v7 = vsel %vm546_vm7, %v1044_v25, %v1040_v36  ;;  %v1047_v38 = vsel %vm546_vm7, %v1042_v34, %v1038_v49  ;;  %v1606_v2 = vpack.c.bf16 %v1019_v28, %v1017_v39  ;;  %v1035_v40 = vmul.f32 %v1030_v30, %v2387_v52 }
 0x301   : > { %1591 = vmatpush1.bf16.msra.mxu1 %v1590_v45  ;;  %1516 = vmatprep.mubr.msk.f32.mxu1 %vm613_vm0, %v2247_v6  ;;  %v1598_v6 = vpack.c.bf16 %v1003_v53, %v1001_v16  ;;  %v1058_v46 = vpop.permute.xlu0 %1057  ;;  %v1033_v27 = vmul.f32 %v1029_v31, %v2387_v52  ;;  %v1052_v48 = vmul.f32 %v1048_v7, %v2410_v11  ;;  %v1515_v53 = vld [vmem:[%s2161_s13 + $0x38] sm:$0xff] }
 0x302   : > { %1593 = vmatprep.subr.bf16.mxu1 %v1592_v15  ;;  %v1060_v12 = vpop.permute.xlu1 %1059  ;;  %v1050_v4 = vmul.f32 %v1047_v38, %v2410_v11  ;;  %v1046_v55 = vsel %vm546_vm7, %v1040_v36, %v1044_v25  ;;  %v1045_v60 = vsel %vm546_vm7, %v1038_v49, %v1042_v34  ;;  %v1608_v62 = vpack.c.bf16 %v1036_v41, %v1034_v63  ;;  %v1513_v15 = vld [vmem:[%s2161_s13 + $0x28] sm:$0xff]  ;;  %v1512_v34 = vld [vmem:[%s2161_s13 + $0x20] sm:$0xff]  ;;  %v2998_v63 = vld [vmem:[#allocation26_spill] sm:$0xff] }
 0x303   : > { %v1064_v21 = vsel %vm571_vm8, %v1060_v12, %v1056_v42  ;;  %v1063_v45 = vsel %vm571_vm8, %v1058_v46, %v1054_v37  ;;  %v1610_v52 = vpack.c.bf16 %v1035_v40, %v1033_v27  ;;  %v1051_v11 = vmul.f32 %v1046_v55, %v2407_v10 }
 0x304   : > { %v1049_v51 = vmul.f32 %v1045_v60, %v2407_v10  ;;  %v1612_v36 = vpack.c.bf16 %v1052_v48, %v1050_v4  ;;  %v1062_v49 = vsel %vm571_vm8, %v1056_v42, %v1060_v12  ;;  %v1068_v56 = vmul.f32 %v2433_v33, %v1064_v21 }
 0x305   : > { %1595 = vmatpush1.bf16.msra.mxu1 %v1594_v26  ;;  %v1061_v14 = vsel %vm571_vm8, %v1054_v37, %v1058_v46  ;;  %v1066_v22 = vmul.f32 %v2433_v33, %v1063_v45  ;;  %v1067_v0 = vmul.f32 %v2428_v32, %v1062_v49  ;;  %v1620_v25 = vpack.c.bf16 %v1515_v53, %v1513_v15  ;;  %v1514_v26 = vld [vmem:[%s2161_s13 + $0x30] sm:$0xff]  ;;  %v2994_v33 = vld [vmem:[#allocation18_spill] sm:$0xff] }
 0x306   : > { %1597 = vmatprep.subr.bf16.mxu1 %v1596_v20  ;;  %v1614_v47 = vpack.c.bf16 %v1051_v11, %v1049_v51  ;;  %v1065_v10 = vmul.f32 %v2428_v32, %v1061_v14  ;;  %v1622_v13 = vpack.c.bf16 %v1514_v26, %v1512_v34  ;;  %v2993_v32 = vld [vmem:[#allocation17_spill] sm:$0xff] }
 0x307   : > { %v1616_v16 = vpack.c.bf16 %v1068_v56, %v1066_v22 }
 0x308   : > { %v1618_v18 = vpack.c.bf16 %v1067_v0, %v1065_v10 }
 0x309   : > { %1599 = vmatpush1.bf16.msra.mxu1 %v1598_v6 }
 0x30a   : > { %1601 = vmatprep.subr.bf16.mxu1 %v1600_v17 }
 0x30d   : > { %1603 = vmatpush1.bf16.msra.mxu1 %v1602_v29 }
 0x30e   : > { %1605 = vmatprep.subr.bf16.mxu1 %v1604_v61 }
 0x311   : > { %1607 = vmatpush1.bf16.msra.mxu1 %v1606_v2 }
 0x312   : > { %1609 = vmatprep.subr.bf16.mxu1 %v1608_v62  ;;  %v2999_v62 = vld [vmem:[#allocation31_spill] sm:$0xff] }
 0x315   : > { %1611 = vmatpush1.bf16.msra.mxu1 %v1610_v52 }
 0x316   : > { %1613 = vmatprep.subr.bf16.mxu1 %v1612_v36 }
 0x319   : > { %1615 = vmatpush1.bf16.msra.mxu1 %v1614_v47 }
 0x31a   : > { %1617 = vmatprep.subr.bf16.mxu1 %v1616_v16 }
 0x31d   : > { %1619 = vmatpush1.bf16.msra.mxu1 %v1618_v18 }
 0x31e   : > { %1621 = vmatprep.subr.bf16.mxu1 %v1620_v25 }
 0x321   : > { %1623 = vmatpush1.bf16.msra.mxu1 %v1622_v13 }
 0x324   : > { %1134 = vmatmul.mubr.f32.vlgmr.msra.gmra.mrb[4].mxu1 %v2451_v57 }
 0x325   : > { %1517 = vmatprep.mubr.msk.f32.mxu1 %vm613_vm0, %v2453_v58 }
 0x328   : > { %1140 = vmatmul.mubr.f32.gmra.mrb[6].mxu1 %v2458_v1 }
 0x329   : > { %1518 = vmatprep.mubr.msk.f32.mxu1 %vm613_vm0, %v2461_v3 }
 0x32c   : > { %1146 = vmatmul.mubr.f32.gmra.mrb[8].mxu1 %v2465_v5 }
 0x32d   : > { %1519 = vmatprep.mubr.msk.f32.mxu1 %vm613_vm0, %v2468_v59  ;;  %v2996_v59 = vld [vmem:[#allocation20_spill] sm:$0xff] }
 0x330   : > { %1152 = vmatmul.mubr.f32.gmra.mrb[10].mxu1 %v2993_v32 }
 0x331   : > { %1520 = vmatprep.mubr.msk.f32.mxu1 %vm613_vm0, %v2994_v33 }
 0x334   : > { %1158 = vmatmul.mubr.f32.gmra.mrb[12].mxu1 %v2995_v35 }
 0x335   : > { %1232 = vmatprep.mubr.f32.mxu1 %v2992_v50 }
 0x3cf   : > { %v878_v57 = vpop.f32.mrb[0].mxu1 }
 0x3d0   : > { %v880_v58 = vpop.f32.mrb[1].mxu1 }
 0x3d1   : > { %v889_v1 = vmax.f32 %v878_v57, %v880_v58 }
 0x3d3   : > { %890 = vmax.xlane.f32.xlu0 %v889_v1  ;;  %v884_v20 = vpop.f32.mrb[2].mxu1 }
 0x3d4   : > { %v886_v3 = vpop.f32.mrb[3].mxu1 }
 0x3d5   : > { %v892_v6 = vmax.f32 %v884_v20, %v886_v3 }
 0x3d7   : > { %893 = vmax.xlane.f32.xlu1 %v892_v6 }
 0x3f7   : > { %v1135_v5 = vpop.f32.mrb[4].mxu1 }
 0x3f8   : > { %v1137_v17 = vpop.f32.mrb[5].mxu1  ;;  %v2779_v43 = vadd.f32 %v1135_v5, %v2996_v59 }
 0x3f9   : > { %v2776_v44 = vadd.f32 %v1137_v17, %v2996_v59  ;;  %v373_v59 = vld [vmem:[%s2921_s4 + $0x18] sm:$0xff] }
 0x3fa   : > { %v1164_v39 = vmax.f32 %v2779_v43, 0.0 }
 0x3fb   : > { %v1141_v23 = vpop.f32.mrb[6].mxu1  ;;  %v1165_v29 = vmax.f32 %v2776_v44, 0.0 }
 0x3fc   : > { %v2782_v42 = vadd.f32 %v1141_v23, %v2997_v24  ;;  %v1143_v37 = vpop.f32.mrb[7].mxu1  ;;  %v374_v23 = vld [vmem:[%s2921_s4 + $0x20] sm:$0xff] }
 0x3fd   : > { %v2785_v8 = vadd.f32 %v1143_v37, %v2997_v24 }
 0x3fe   : > { %v1166_v9 = vmax.f32 %v2782_v42, 0.0 }
 0x3ff   : > { %v1167_v28 = vmax.f32 %v2785_v8, 0.0 }
 0x400   : > { %v1626_v31 = vpack.c.bf16 %v1166_v9, %v1164_v39 }
 0x401   : > { %v1624_v30 = vpack.c.bf16 %v1167_v28, %v1165_v29 }
 0x403   : > { %1625 = vmatprep.subr.bf16.mxu1 %v1624_v30  ;;  %v2799_v61 = vpop.f32.mrb[10].mxu1 }
 0x404   : > { %1627 = vmatpush1.bf16.msra.mxu1 %v1626_v31  ;;  %v2801_v41 = vpop.f32.mrb[11].mxu1 }
 0x407   : > { %1521 = vmatmul.mubr.msk.f32.vlgmr.msra.gmra.mrb[8].mxu1 %vm728_vm9, %v2998_v63  ;;  %v2805_v7 = vpop.f32.mrb[12].mxu1 }
 0x408   : > { %v2807_v38 = vpop.f32.mrb[13].mxu1  ;;  %1311 = vmatprep.mubr.f32.mxu1 %v2992_v50 }
 0x460   : > { %v891_v2 = vpop.xlane.xlu0 %890 }
 0x461   : > { %v895_v12 = vsub.f32 %v878_v57, %v891_v2  ;;  %v896_v46 = vsub.f32 %v880_v58, %v891_v2 }
 0x463   : > { %v899_v40 = vmul.f32 1.442695, %v895_v12  ;;  %v901_v27 = vmul.f32 1.442695, %v896_v46 }
 0x464   : > { %v894_v51 = vpop.xlane.xlu1 %893 }
 0x465   : > { %1715 = vpow2.f32 %v899_v40  ;;  %v897_v36 = vsub.f32 %v884_v20, %v894_v51  ;;  %v898_v49 = vsub.f32 %v886_v3, %v894_v51  ;;  %v3000_v40 = vld [vmem:[#allocation27_spill] sm:$0xff] }
 0x466   : > { %1717 = vpow2.f32 %v901_v27 }
 0x467   : > { %v903_v56 = vmul.f32 1.442695, %v897_v36  ;;  %v905_v14 = vmul.f32 1.442695, %v898_v49 }
 0x469   : > { %1719 = vpow2.f32 %v903_v56 }
 0x46a   : > { %1721 = vpow2.f32 %v905_v14 }
 0x46f   : > { %v2810_v48 = vpop.eup %1715 }
 0x470   : > { %v2812_v4 = vpop.eup %1717 }
 0x471   : > { %v907_v55 = vadd.f32 %v2812_v4, %v2810_v48 }
 0x473   : > { %908 = vadd.xlane.f32.xlu1 %v907_v55  ;;  %v1720_v16 = vpop.eup %1719  ;;  %v3001_v55 = vld [vmem:[#allocation28_spill] sm:$0xff] }
 0x474   : > { %v1722_v25 = vpop.eup %1721 }
 0x4da   : > { %v1234_v60 = vpop.f32.mrb[8].mxu1 }
 0x4db   : > { %v1632_v21 = vadd.f32 %v1234_v60, %v2999_v62  ;;  %v1236_v45 = vpop.f32.mrb[9].mxu1 }
 0x4dc   : > { %v1633_v50 = vadd.f32 %v1236_v45, %v2999_v62  ;;  %v3002_v45 = vld [vmem:[#allocation23_spill] sm:$0xff] }
 0x4dd   : > { %v1239_v11 = vmax.f32 %v1632_v21, 0.0 }
 0x4de   : > { %v1240_v52 = vmax.f32 %v1633_v50, 0.0  ;;  %v3003_v50 = vmax.f32 %v3002_v45, 0.0 }
 0x4e0   : > { %1241 = vmatprep.subr.mxu0 %v1240_v52  ;;  %1628 = vmatprep.subr.mxu1 %v1240_v52 }
 0x4e1   : > { %1242 = vmatpush1.msra.mxu0 %v1239_v11  ;;  %1629 = vmatpush1.msra.mxu1 %v1239_v11  ;;  %v3004_v11 = vld [vmem:[#allocation22_spill] sm:$0xff] }
 0x4e2   : > { %1522 = vmatmul.mubr.msk.f32.vlgmr.msra.gmra.mrb[10].mxu0 %vm805_vm10, %v2653_v19  ;;  %1523 = vmatmul.mubr.msk.f32.vlgmr.msra.gmra.mrb[14].mxu1 %vm805_vm10, %v2673_v54  ;;  %v910_v19 = vadd.f32 %v1722_v25, %v1720_v16  ;;  %v3005_v51 = vmax.f32 %v3004_v11, 0.0 }
 0x500   : > { %v909_v24 = vpop.xlane.xlu1 %908 }
 0x5b5   : > { %v1307_v22 = vpop.f32.mrb[10].mxu0  ;;  %v1313_v47 = vpop.f32.mrb[14].mxu1 }
 0x5b6   : > { %v1309_v0 = vpop.f32.mrb[11].mxu0  ;;  %v1315_v10 = vpop.f32.mrb[15].mxu1 }
 0x5b7   : > { %v1318_v15 = vmax.f32 %v1307_v22, %v1309_v0  ;;  %v1321_v53 = vmax.f32 %v1313_v47, %v1315_v10 }
 0x5b9   : > { %1319 = vmax.xlane.f32.xlu0 %v1318_v15  ;;  %v3006_v15 = vld [vmem:[#allocation29_spill] sm:$0xff] }
 0x5bd   : > { %1322 = vmax.xlane.f32.xlu0 %v1321_v53 }
 0x5c1   : > { %911 = vadd.xlane.f32.xlu0 %v910_v19  ;;  %v3007_v19 = vld [vmem:[#allocation30_spill] sm:$0xff] }
 0x646   : > { %v1320_v54 = vpop.xlane.xlu0 %1319 }
 0x647   : > { %v1324_v34 = vsub.f32 %v1307_v22, %v1320_v54  ;;  %v1325_v26 = vsub.f32 %v1309_v0, %v1320_v54 }
 0x649   : > { %v1328_v18 = vmul.f32 1.442695, %v1324_v34  ;;  %v1330_v13 = vmul.f32 1.442695, %v1325_v26 }
 0x64a   : > { %v1323_v32 = vpop.xlane.xlu0 %1322 }
 0x64b   : > { %1723 = vpow2.f32 %v1328_v18  ;;  %v1326_v33 = vsub.f32 %v1313_v47, %v1323_v32  ;;  %v1327_v35 = vsub.f32 %v1315_v10, %v1323_v32 }
 0x64c   : > { %1725 = vpow2.f32 %v1330_v13 }
 0x64d   : > { %v1332_v57 = vmul.f32 1.442695, %v1326_v33  ;;  %v1334_v58 = vmul.f32 1.442695, %v1327_v35 }
 0x64e   : > { %v912_v37 = vpop.xlane.xlu0 %911 }
 0x64f   : > { %1727 = vpow2.f32 %v1332_v57  ;;  %v3008_v57 = vld [vmem:[#allocation24_spill] sm:$0xff] }
 0x650   : > { %1729 = vpow2.f32 %v1334_v58  ;;  %v3009_v58 = vmax.f32 %v3008_v57, 0.0 }
 0x651   : > { %1731 = vrcp.f32 %v909_v24 }
 0x652   : > { %1733 = vrcp.f32 %v912_v37 }
 0x655   : > { %v1724_v1 = vpop.eup %1723 }
 0x656   : > { %v1726_v20 = vpop.eup %1725 }
 0x657   : > { %v1336_v3 = vadd.f32 %v1726_v20, %v1724_v1 }
 0x659   : > { %v1728_v6 = vpop.eup %1727  ;;  %1337 = vadd.xlane.f32.xlu1 %v1336_v3 }
 0x65a   : > { %v1730_v5 = vpop.eup %1729 }
 0x65b   : > { %v1339_v17 = vadd.f32 %v1730_v5, %v1728_v6  ;;  %v1732_v31 = vpop.eup %1731 }
 0x65c   : > { %v915_v2 = vmul.f32 %v1732_v31, %v2810_v48  ;;  %v916_v46 = vmul.f32 %v1732_v31, %v2812_v4  ;;  %v1734_v49 = vpop.eup %1733 }
 0x65d   : > { %1340 = vadd.xlane.f32.xlu0 %v1339_v17  ;;  %v917_v0 = vmul.f32 %v1734_v49, %v1720_v16  ;;  %v918_v10 = vmul.f32 %v1734_v49, %v1722_v25 }
 0x66a   : > { %605 = vperm.xlu1 %1714, %v373_v59  }
 0x673   : > { %610 = vperm.xlu0 %1713, %v374_v23  }
 0x6e6   : > { %v1338_v30 = vpop.xlane.xlu1 %1337 }
 0x6e7   : > { %1735 = vrcp.f32 %v1338_v30 }
 0x6ea   : > { %v1341_v63 = vpop.xlane.xlu0 %1340  ;;  %v606_v12 = vpop.permute.xlu1 %605 }
 0x6eb   : > { %1737 = vrcp.f32 %v1341_v63  ;;  %v714_v27 = vadd.f32 %v3000_v40, %v606_v12  ;;  %v716_v60 = vadd.f32 %v3001_v55, %v606_v12  ;;  %v1154_v14 = vadd.f32 %v2799_v61, %v606_v12 }
 0x6ec   : > { %v1156_v22 = vadd.f32 %v2801_v41, %v606_v12 }
 0x6ed   : > { %v919_v62 = vmul.f32 %v915_v2, %v714_v27  ;;  %v920_v21 = vmul.f32 %v916_v46, %v716_v60 }
 0x6ef   : > { %v923_v52 = vadd.f32 %v919_v62, %v3003_v50  ;;  %v924_v36 = vadd.f32 %v920_v21, %v3005_v51 }
 0x6f1   : > { %v1736_v56 = vpop.eup %1735  ;;  %927 = vst [vmem:[%s2837_s22] sm:$0xff] %v923_v52  ;;  %928 = vst [vmem:[%s2837_s22 + $0x8] sm:$0xff] %v924_v36 }
 0x6f2   : > { %v1344_v48 = vmul.f32 %v1736_v56, %v1724_v1  ;;  %v1345_v4 = vmul.f32 %v1736_v56, %v1726_v20  ;;  %v611_v47 = vpop.permute.xlu0 %610  ;;  %v3010_v20 = vld [vmem:[#allocation25_spill] sm:$0xff] }
 0x6f3   : > { %v720_v53 = vadd.f32 %v3006_v15, %v611_v47  ;;  %v722_v54 = vadd.f32 %v3007_v19, %v611_v47  ;;  %v1160_v61 = vadd.f32 %v2805_v7, %v611_v47  ;;  %v1162_v41 = vadd.f32 %v2807_v38, %v611_v47 }
 0x6f4   : > { %v1348_v34 = vmul.f32 %v1344_v48, %v1154_v14  ;;  %v1349_v26 = vmul.f32 %v1345_v4, %v1156_v22  ;;  %v3011_v3 = vmax.f32 %v3010_v20, 0.0 }
 0x6f5   : > { %v1738_v18 = vpop.eup %1737  ;;  %v921_v13 = vmul.f32 %v917_v0, %v720_v53  ;;  %v922_v32 = vmul.f32 %v918_v10, %v722_v54 }
 0x6f6   : > { %v1352_v16 = vadd.f32 %v1348_v34, %v1164_v39  ;;  %v1353_v25 = vadd.f32 %v1349_v26, %v1165_v29  ;;  %v1346_v33 = vmul.f32 %v1738_v18, %v1728_v6  ;;  %v1347_v35 = vmul.f32 %v1738_v18, %v1730_v5 }
 0x6f7   : > { %v925_v1 = vadd.f32 %v921_v13, %v3009_v58  ;;  %v926_v7 = vadd.f32 %v922_v32, %v3011_v3 }
 0x6f8   : > { %1524 = vst [vmem:[%s2837_s22 + $0x20] sm:$0xff] %v1352_v16  ;;  %1525 = vst [vmem:[%s2837_s22 + $0x28] sm:$0xff] %v1353_v25  ;;  %v1350_v43 = vmul.f32 %v1346_v33, %v1160_v61  ;;  %v1351_v39 = vmul.f32 %v1347_v35, %v1162_v41 }
 0x6f9   : > { %929 = vst [vmem:[%s2837_s22 + $0x10] sm:$0xff] %v925_v1  ;;  %930 = vst [vmem:[%s2837_s22 + $0x18] sm:$0xff] %v926_v7 }
 0x6fa   : > { %v1354_v44 = vadd.f32 %v1350_v43, %v1166_v9  ;;  %v1355_v29 = vadd.f32 %v1351_v39, %v1167_v28 }
 0x6fc   : > { %1526 = vst [vmem:[%s2837_s22 + $0x30] sm:$0xff] %v1354_v44  ;;  %1527 = vst [vmem:[%s2837_s22 + $0x38] sm:$0xff] %v1355_v29 }
 0x6fd   : > { %1840 = shalt.err (!%p1837_p6)
}
 0x6fe   : > { %s1841_s20 = scalar_lea.hbm %s2864_s15, 1024  ;;  %s1845_s29 = scalar_lea.hbm %s2924_s7, 2048 }
 0x6ff   : > { %p1842_p8 = scmp.ne.s32.totalorder %s2864_s15, %s1841_s20  ;;  %p1846_p4 = scmp.lt.u32.totalorder %s2864_s15, %s2924_s7 }
 0x700   : > { %p1847_p11 = scmp.lt.u32.totalorder %s1845_s29, %s1841_s20  ;;  %p1849_p3 = scmp.lt.u32.totalorder %s1841_s20, %s2864_s15 }
 0x701   : > { %p1843_p10 = pnand %p1842_p8, %p2054_p12 }
 0x702   : > { %p1848_p13 = por %p1847_p11, %p1846_p4 }
 0x703   : > { %p1844_p0 = pneg %p1843_p10 }
 0x704   : > { %p1850_p7 = por %p1849_p3, %p1848_p13 }
 0x706   : > { %p1851_p9 = pnand %p1850_p7, %p1844_p0 }
 0x708   : > { %1854 = shalt.err (!%p1851_p9)
}
 0x709   : > { %s1919_s12 = smov 256  }
 0x70a   : > { %1646 = dma.vmem_to_hbm [thread:$0]  (%p2054_p12), %s2870_s26, 1024, %s2864_s15, %s1362_s28, %s1919_s12, %s1919_s12, %s1909_s30  }
 0x70b PF: > { %s3012_s9 = sld [smem:[#allocation14_spill]]  ;;  %s1391_s22 = sand.u32 1, %s1889_s24  }
 0x70c   : > { %p3014_p5 = scmp.ge.s32.totalorder %s1901_s27, 2  ;;  %s1392_s23 = scalar_lea.sflag [#allocation4], %s1391_s22 }
 0x711   : > { %p3013_p1 = scmp.ne.s32.totalorder %s3012_s9, 0 }
 0x713   : > { %p1660_p2 = pnand %p3014_p5, %p3013_p1 }
 0x715   : > { %1884 = dma.done.wait (!%p1660_p2), %s1392_s23, 1024  }
 0x716   : > { %1886 = vsyncadd (!%p1660_p2), %s1392_s23, 4294966272  ;;  %s3015_s27 = sld [smem:[#allocation15_spill]]  ;;  %s3016_s19 = sld [smem:[#allocation13_spill]] }
 0x717   : > { %s3017_s26 = sld [smem:[#allocation16_spill]]  ;;  %s3018_s24 = smov %s1893_s25 }
 0x71c   : > { %p23_p6 = scmp.ge.s32.totalorder %s3015_s27, 4   ;;  %s3019_s25 = smov %s3016_s19 }
 0x71e   :  { %25 = sbr.rel (!%p23_p6) target bundleno = 10 (0xa), region = 113 }
 0x725   :  { %1397 = vsyncpa [#allocation3], 1 }
 0x726   :  { %1399 = vsyncpa [#allocation3 + $0x1], 1 }
 0x727   :  { %1400 = vsyncpa [#allocation6], 1 }
 0x728   :  { %1402 = vsyncpa [#allocation6 + $0x1], 1 }
 0x729   :  { %1403 = vsyncpa [#allocation4], 1 }
 0x72a   :  { %1405 = vsyncpa [#allocation4 + $0x1], 1 }

</bundles_post_ra>
